<compile_context>
chip_gen: v5e
topology: v5e:2x2
jax: 0.10.0
libtpu: 0.0.40
codegen_flags: <defaults>
</compile_context>

<pallas_src>
import functools

import jax
import jax.numpy as jnp
from jax import lax
from jax.experimental import pallas as pl
from jax.experimental.pallas import tpu as pltpu


# ---------------------------------------------------------------------------
# Pallas kernel: whole bidirectional recurrence in one kernel invocation.
# ---------------------------------------------------------------------------
def _bilstm_kernel(
    x_ref,      # (T*B, 2*D_in)  bf16; row t*B+b = [x[b,t,:] | x[b,T-1-t,:]]
    w_ih_ref,   # (2*D_in, 8*Hp) bf16; block-diagonal over direction,
                #                gate-pair interleaved cols [i_f i_b|f_f f_b|g_f g_b|o_f o_b]
    w_hh_ref,   # (2*Hp, 8*Hp)   bf16; block-diagonal over direction, same col layout
    b_ref,      # (1, 8*Hp)      f32;  b_ih + b_hh, both directions, padded lanes zero
    out_ref,    # (T, B, 2*Hp)   f32;  out[t] = fused [h_fwd(t) | h_bwd(step t)]
    *,
    seq_len,
    batch,
    hidden_pad,
):
    T, B, Hp = seq_len, batch, hidden_pad
    Hp2 = 2 * Hp  # multiple of 128 -> all gate slices are lane-aligned

    # ---- hoisted: input projection for ALL timesteps and BOTH directions in a
    # single MXU pass (bf16 operands, f32 accumulate).  The block-diagonal
    # w_ih already routes x[t] to forward gate columns and x[T-1-t] to backward
    # gate columns, and the fused bias is added once here, so the loop body only
    # has to slice gx — no select, no bias add on the serial chain.
    gx = (
        jnp.dot(x_ref[...], w_ih_ref[...], preferred_element_type=jnp.float32)
        + b_ref[...]
    )  # (T*B, 8*Hp) f32

    w_hh = w_hh_ref[...]  # (2*Hp, 8*Hp) bf16

    # Fused per-direction state: lanes [0:Hp] = forward, [Hp:2Hp] = backward
    # (real data in the first H lanes of each half; padded lanes stay 0).
    h = jnp.zeros((B, Hp2), jnp.float32)
    c = jnp.zeros((B, Hp2), jnp.float32)
    hs = []

    # T is small and static -> full unroll; exactly one serially-dependent MXU
    # dot per step, bf16 operands, 512-lane-wide gate output.
    for t in range(T):
        gates = gx[t * B:(t + 1) * B, :] + jnp.dot(
            h.astype(jnp.bfloat16), w_hh, preferred_element_type=jnp.float32
        )  # (B, 8*Hp) f32

        i = jax.nn.sigmoid(gates[:, 0 * Hp2:1 * Hp2])
        f = jax.nn.sigmoid(gates[:, 1 * Hp2:2 * Hp2])
        g = jnp.tanh(gates[:, 2 * Hp2:3 * Hp2])
        o = jax.nn.sigmoid(gates[:, 3 * Hp2:4 * Hp2])
        c = f * c + i * g
        h = o * jnp.tanh(c)
        hs.append(h)

    # ---- single lane-dense store after the loop (last dim 2*Hp >= 128): no
    # masked per-step stores sitting on the recurrence critical path.
    out_ref[...] = jnp.stack(hs, axis=0)


# ---------------------------------------------------------------------------
# Weight packing helpers (wrapper-side, tiny one-time XLA ops)
# ---------------------------------------------------------------------------
def _pack_gate_cols(w_f, w_b, H, H_pad):
    """w_f, w_b: (R, 4H) with columns grouped [i|f|g|o] per direction.
    Returns (R, 8*H_pad) with columns [i_f i_b | f_f f_b | g_f g_b | o_f o_b],
    each direction block zero-padded from H to H_pad columns."""
    R = w_f.shape[0]
    pad_w = H_pad - H
    parts = []
    for k in range(4):
        for w in (w_f, w_b):
            parts.append(w[:, k * H:(k + 1) * H])
            if pad_w:
                parts.append(jnp.zeros((R, pad_w), w.dtype))
    return jnp.concatenate(parts, axis=1)


# ---------------------------------------------------------------------------
# Wrapper (layout + weight packing + merge_out glue)
# ---------------------------------------------------------------------------
@functools.partial(jax.jit, static_argnames=("hidden_size", "merge_out"))
def encoder_lstm_forward(x, params, *, hidden_size, merge_out=False):
    """
    x: (B, T, D_in) float32 (PyTorch batch_first layout)
    params: PyTorch-layout weights:
        w_ih_f, w_hh_f : (4H, D_in), (4H, H);  b_ih_f, b_hh_f : (4H,)
        w_ih_b, w_hh_b, b_ih_b, b_hh_b : same for the reverse direction
    Returns (x_enc, h_n) matching nn.LSTM(bidirectional=True, batch_first=True):
        x_enc : (B, T, 2H)  (or (B, T, H) if merge_out)
        h_n   : (2, B, H)
    """
    B, T, D_in = x.shape
    H = hidden_size
    Hp = -(-H // 64) * 64          # per-direction pad so 2*Hp is a multiple of 128
    f32 = jnp.float32

    # time-major rows with both directions' per-step inputs side by side:
    # row t*B+b = [x[b, t, :] | x[b, T-1-t, :]]
    x_f = jnp.transpose(x, (1, 0, 2)).astype(f32)            # (T, B, D_in)
    x_merged = jnp.concatenate([x_f, x_f[::-1]], axis=-1)    # (T, B, 2*D_in)
    x_merged = x_merged.reshape(T * B, 2 * D_in).astype(jnp.bfloat16)

    # block-diagonal input weights: rows [0:D_in] feed forward gate columns,
    # rows [D_in:2*D_in] feed backward gate columns.  Shape (2*D_in, 8*Hp).
    zeros_din = jnp.zeros((D_in, 4 * H), f32)
    w_ih_cat = _pack_gate_cols(
        jnp.concatenate([params["w_ih_f"].T.astype(f32), zeros_din], axis=0),
        jnp.concatenate([zeros_din, params["w_ih_b"].T.astype(f32)], axis=0),
        H, Hp,
    ).astype(jnp.bfloat16)

    # block-diagonal recurrent weights: rows [0:Hp]=h_f -> fwd gate cols,
    # rows [Hp:2Hp]=h_b -> bwd gate cols; padded rows/cols are zero.
    whh_f_t = params["w_hh_f"].T.astype(f32)                  # (H, 4H)
    whh_b_t = params["w_hh_b"].T.astype(f32)                  # (H, 4H)
    w_hh_cat = _pack_gate_cols(
        jnp.concatenate([whh_f_t, jnp.zeros((2 * Hp - H, 4 * H), f32)], axis=0),
        jnp.concatenate([jnp.zeros((Hp, 4 * H), f32), whh_b_t,
                         jnp.zeros((Hp - H, 4 * H), f32)], axis=0),
        H, Hp,
    ).astype(jnp.bfloat16)                                    # (2*Hp, 8*Hp)

    # fused biases (b_ih + b_hh), padded lanes zero: (1, 8*Hp), kept f32.
    b_cat = _pack_gate_cols(
        (params["b_ih_f"] + params["b_hh_f"]).reshape(1, 4 * H).astype(f32),
        (params["b_ih_b"] + params["b_hh_b"]).reshape(1, 4 * H).astype(f32),
        H, Hp,
    )

    vmem = pl.BlockSpec(memory_space=pltpu.MemorySpace.VMEM)

    hs = pl.pallas_call(
        functools.partial(_bilstm_kernel, seq_len=T, batch=B, hidden_pad=Hp),
        out_shape=jax.ShapeDtypeStruct((T, B, 2 * Hp), jnp.float32),
        in_specs=[vmem, vmem, vmem, vmem],
        out_specs=vmem,
    )(x_merged, w_ih_cat, w_hh_cat, b_cat)

    # hs[t, :, :H]      = forward hidden at time t
    # hs[t, :, Hp:Hp+H] = backward hidden at scan step t (== output time T-1-t)
    fwd = hs[:, :, :H]                       # (T, B, H), indexed by output time
    bwd = hs[::-1, :, Hp:Hp + H]             # (T, B, H), indexed by output time
    x_enc = jnp.transpose(jnp.concatenate([fwd, bwd], axis=-1), (1, 0, 2))  # (B,T,2H)

    h_n = jnp.stack([hs[T - 1, :, :H], hs[T - 1, :, Hp:Hp + H]], axis=0)    # (2,B,H)

    if merge_out:
        x_enc = (x_enc[:, :, :H] + x_enc[:, :, H:]) / 2.0

    return x_enc, h_n


# ---------------------------------------------------------------------------
# Pure-JAX f32 reference (correctness check against the kernel)
# ---------------------------------------------------------------------------
def _reference_forward(x, params, *, hidden_size):
    H = hidden_size
    B, T, _ = x.shape

    def run_dir(xs, w_ih, w_hh, b_ih, b_hh):
        def step(carry, x_t):
            h, c = carry
            gates = x_t @ w_ih.T + b_ih + h @ w_hh.T + b_hh
            i = jax.nn.sigmoid(gates[:, 0 * H:1 * H])
            f = jax.nn.sigmoid(gates[:, 1 * H:2 * H])
            g = jnp.tanh(gates[:, 2 * H:3 * H])
            o = jax.nn.sigmoid(gates[:, 3 * H:4 * H])
            c = f * c + i * g
            h = o * jnp.tanh(c)
            return (h, c), h

        init = (jnp.zeros((B, H)), jnp.zeros((B, H)))
        (h_last, _), hs = lax.scan(step, init, xs)
        return hs, h_last  # hs: (T, B, H)

    x_tbd = jnp.transpose(x, (1, 0, 2))
    hs_f, h_f = run_dir(x_tbd, params["w_ih_f"], params["w_hh_f"],
                        params["b_ih_f"], params["b_hh_f"])
    hs_b_rev, h_b = run_dir(x_tbd[::-1], params["w_ih_b"], params["w_hh_b"],
                            params["b_ih_b"], params["b_hh_b"])
    hs_b = hs_b_rev[::-1]
    x_enc = jnp.concatenate(
        [jnp.transpose(hs_f, (1, 0, 2)), jnp.transpose(hs_b, (1, 0, 2))], axis=-1
    )
    h_n = jnp.stack([h_f, h_b], axis=0)
    return x_enc, h_n


# ---------------------------------------------------------------------------
if __name__ == "__main__":
    # Module hyper-params (small, consistent with __init__):
    #   n_markers=4, with_likelihood=True -> input_size = 3*4 = 12
    #   hidden_size=32, num_layers=1, bidirectional=True, merge_out=False
    B, T = 2, 8
    N_MARKERS = 4
    D_IN = 3 * N_MARKERS          # 12
    H = 32

    key = jax.random.PRNGKey(0)
    keys = jax.random.split(key, 9)

    bound = 1.0 / jnp.sqrt(jnp.float32(H))

    def u(k, shape):
        return jax.random.uniform(k, shape, jnp.float32, -bound, bound)

    params = {
        "w_ih_f": u(keys[0], (4 * H, D_IN)),
        "w_hh_f": u(keys[1], (4 * H, H)),
        "b_ih_f": u(keys[2], (4 * H,)),
        "b_hh_f": u(keys[3], (4 * H,)),
        "w_ih_b": u(keys[4], (4 * H, D_IN)),
        "w_hh_b": u(keys[5], (4 * H, H)),
        "b_ih_b": u(keys[6], (4 * H,)),
        "b_hh_b": u(keys[7], (4 * H,)),
    }

    x = jax.random.normal(keys[8], (B, T, D_IN), jnp.float32)

    x_enc, h_n = encoder_lstm_forward(x, params, hidden_size=H, merge_out=False)
    jax.block_until_ready((x_enc, h_n))

    assert x_enc.shape == (B, T, 2 * H)
    assert h_n.shape == (2, B, H)

    # sanity check against the pure-JAX f32 reference; tolerance loosened since
    # the kernel feeds the MXU bf16 operands (master state stays f32).
    x_enc_ref, h_n_ref = _reference_forward(x, params, hidden_size=H)
    TOL = 5e-2
    assert jnp.max(jnp.abs(x_enc - x_enc_ref)) < TOL
    assert jnp.max(jnp.abs(h_n - h_n_ref)) < TOL

    # merge_out branch (wrapper glue) check
    x_enc_m, h_n_m = encoder_lstm_forward(x, params, hidden_size=H, merge_out=True)
    jax.block_until_ready((x_enc_m, h_n_m))
    assert jnp.max(
        jnp.abs(x_enc_m - (x_enc_ref[:, :, :H] + x_enc_ref[:, :, H:]) / 2.0)
    ) < TOL
    assert jnp.max(jnp.abs(h_n_m - h_n_ref)) < TOL

    print("KERNEL_OK")
</pallas_src>

<mosaic_0001>
module attributes {stable_mosaic.version = 11 : i64} {
  func.func @_bilstm_kernel(%arg0: memref<16x24xbf16, #tpu.memory_space<vmem>>, %arg1: memref<24x512xbf16, #tpu.memory_space<vmem>>, %arg2: memref<128x512xbf16, #tpu.memory_space<vmem>>, %arg3: memref<1x512xf32, #tpu.memory_space<vmem>>, %arg4: memref<8x2x128xf32, #tpu.memory_space<vmem>>) attributes {dimension_semantics = [], scalar_prefetch = 0 : i64, scratch_operands = 0 : i64, tpu.core_type = #tpu.core_type<tc>} {
    %c0 = arith.constant 0 : index
    %c0_0 = arith.constant 0 : index
    %0 = vector.load %arg0[%c0, %c0_0] : memref<16x24xbf16, #tpu.memory_space<vmem>>, vector<16x24xbf16>
    %c0_1 = arith.constant 0 : index
    %c0_2 = arith.constant 0 : index
    %1 = vector.load %arg1[%c0_1, %c0_2] : memref<24x512xbf16, #tpu.memory_space<vmem>>, vector<24x512xbf16>
    %cst = arith.constant dense<0.000000e+00> : vector<16x512xf32>
    %2 = tpu.matmul %0, %1, %cst {dimension_numbers = #tpu.dot_dimension_numbers<[1], [0], [0], [1], [0, 0, 1, 1], [], []>} : vector<16x24xbf16>, vector<24x512xbf16>, vector<16x512xf32> -> vector<16x512xf32>
    %c0_3 = arith.constant 0 : index
    %c0_4 = arith.constant 0 : index
    %3 = vector.load %arg3[%c0_3, %c0_4] : memref<1x512xf32, #tpu.memory_space<vmem>>, vector<1x512xf32>
    %4 = vector.broadcast %3 : vector<1x512xf32> to vector<16x512xf32>
    %5 = arith.addf %2, %4 : vector<16x512xf32>
    %c0_5 = arith.constant 0 : index
    %c0_6 = arith.constant 0 : index
    %6 = vector.load %arg2[%c0_5, %c0_6] : memref<128x512xbf16, #tpu.memory_space<vmem>>, vector<128x512xbf16>
    %cst_7 = arith.constant 0.000000e+00 : f32
    %7 = vector.broadcast %cst_7 : f32 to vector<2x128xf32>
    %cst_8 = arith.constant 0.000000e+00 : f32
    %8 = vector.broadcast %cst_8 : f32 to vector<2x128xf32>
    %9 = vector.extract_strided_slice %5 {offsets = [0, 0], sizes = [2, 512], strides = [1, 1]} : vector<16x512xf32> to vector<2x512xf32>
    %10 = arith.truncf %7 : vector<2x128xf32> to vector<2x128xbf16>
    %cst_9 = arith.constant dense<0.000000e+00> : vector<2x512xf32>
    %11 = tpu.matmul %10, %6, %cst_9 {dimension_numbers = #tpu.dot_dimension_numbers<[1], [0], [0], [1], [0, 0, 1, 1], [], []>} : vector<2x128xbf16>, vector<128x512xbf16>, vector<2x512xf32> -> vector<2x512xf32>
    %12 = arith.addf %9, %11 : vector<2x512xf32>
    %13 = vector.extract_strided_slice %12 {offsets = [0, 0], sizes = [2, 128], strides = [1, 1]} : vector<2x512xf32> to vector<2x128xf32>
    %14 = arith.negf %13 : vector<2x128xf32>
    %15 = math.exp %14 : vector<2x128xf32>
    %cst_10 = arith.constant 1.000000e+00 : f32
    %16 = vector.broadcast %cst_10 : f32 to vector<2x128xf32>
    %17 = arith.addf %16, %15 : vector<2x128xf32>
    %18 = arith.divf %16, %17 : vector<2x128xf32>
    %19 = vector.extract_strided_slice %12 {offsets = [0, 128], sizes = [2, 128], strides = [1, 1]} : vector<2x512xf32> to vector<2x128xf32>
    %20 = arith.negf %19 : vector<2x128xf32>
    %21 = math.exp %20 : vector<2x128xf32>
    %cst_11 = arith.constant 1.000000e+00 : f32
    %22 = vector.broadcast %cst_11 : f32 to vector<2x128xf32>
    %23 = arith.addf %22, %21 : vector<2x128xf32>
    %24 = arith.divf %22, %23 : vector<2x128xf32>
    %25 = vector.extract_strided_slice %12 {offsets = [0, 256], sizes = [2, 128], strides = [1, 1]} : vector<2x512xf32> to vector<2x128xf32>
    %26 = math.tanh %25 : vector<2x128xf32>
    %27 = vector.extract_strided_slice %12 {offsets = [0, 384], sizes = [2, 128], strides = [1, 1]} : vector<2x512xf32> to vector<2x128xf32>
    %28 = arith.negf %27 : vector<2x128xf32>
    %29 = math.exp %28 : vector<2x128xf32>
    %cst_12 = arith.constant 1.000000e+00 : f32
    %30 = vector.broadcast %cst_12 : f32 to vector<2x128xf32>
    %31 = arith.addf %30, %29 : vector<2x128xf32>
    %32 = arith.divf %30, %31 : vector<2x128xf32>
    %33 = arith.mulf %24, %8 : vector<2x128xf32>
    %34 = arith.mulf %18, %26 : vector<2x128xf32>
    %35 = arith.addf %33, %34 : vector<2x128xf32>
    %36 = math.tanh %35 : vector<2x128xf32>
    %37 = arith.mulf %32, %36 : vector<2x128xf32>
    %38 = vector.extract_strided_slice %5 {offsets = [2, 0], sizes = [2, 512], strides = [1, 1]} : vector<16x512xf32> to vector<2x512xf32>
    %39 = arith.truncf %37 : vector<2x128xf32> to vector<2x128xbf16>
    %cst_13 = arith.constant dense<0.000000e+00> : vector<2x512xf32>
    %40 = tpu.matmul %39, %6, %cst_13 {dimension_numbers = #tpu.dot_dimension_numbers<[1], [0], [0], [1], [0, 0, 1, 1], [], []>} : vector<2x128xbf16>, vector<128x512xbf16>, vector<2x512xf32> -> vector<2x512xf32>
    %41 = arith.addf %38, %40 : vector<2x512xf32>
    %42 = vector.extract_strided_slice %41 {offsets = [0, 0], sizes = [2, 128], strides = [1, 1]} : vector<2x512xf32> to vector<2x128xf32>
    %43 = arith.negf %42 : vector<2x128xf32>
    %44 = math.exp %43 : vector<2x128xf32>
    %cst_14 = arith.constant 1.000000e+00 : f32
    %45 = vector.broadcast %cst_14 : f32 to vector<2x128xf32>
    %46 = arith.addf %45, %44 : vector<2x128xf32>
    %47 = arith.divf %45, %46 : vector<2x128xf32>
    %48 = vector.extract_strided_slice %41 {offsets = [0, 128], sizes = [2, 128], strides = [1, 1]} : vector<2x512xf32> to vector<2x128xf32>
    %49 = arith.negf %48 : vector<2x128xf32>
    %50 = math.exp %49 : vector<2x128xf32>
    %cst_15 = arith.constant 1.000000e+00 : f32
    %51 = vector.broadcast %cst_15 : f32 to vector<2x128xf32>
    %52 = arith.addf %51, %50 : vector<2x128xf32>
    %53 = arith.divf %51, %52 : vector<2x128xf32>
    %54 = vector.extract_strided_slice %41 {offsets = [0, 256], sizes = [2, 128], strides = [1, 1]} : vector<2x512xf32> to vector<2x128xf32>
    %55 = math.tanh %54 : vector<2x128xf32>
    %56 = vector.extract_strided_slice %41 {offsets = [0, 384], sizes = [2, 128], strides = [1, 1]} : vector<2x512xf32> to vector<2x128xf32>
    %57 = arith.negf %56 : vector<2x128xf32>
    %58 = math.exp %57 : vector<2x128xf32>
    %cst_16 = arith.constant 1.000000e+00 : f32
    %59 = vector.broadcast %cst_16 : f32 to vector<2x128xf32>
    %60 = arith.addf %59, %58 : vector<2x128xf32>
    %61 = arith.divf %59, %60 : vector<2x128xf32>
    %62 = arith.mulf %53, %35 : vector<2x128xf32>
    %63 = arith.mulf %47, %55 : vector<2x128xf32>
    %64 = arith.addf %62, %63 : vector<2x128xf32>
    %65 = math.tanh %64 : vector<2x128xf32>
    %66 = arith.mulf %61, %65 : vector<2x128xf32>
    %67 = vector.extract_strided_slice %5 {offsets = [4, 0], sizes = [2, 512], strides = [1, 1]} : vector<16x512xf32> to vector<2x512xf32>
    %68 = arith.truncf %66 : vector<2x128xf32> to vector<2x128xbf16>
    %cst_17 = arith.constant dense<0.000000e+00> : vector<2x512xf32>
    %69 = tpu.matmul %68, %6, %cst_17 {dimension_numbers = #tpu.dot_dimension_numbers<[1], [0], [0], [1], [0, 0, 1, 1], [], []>} : vector<2x128xbf16>, vector<128x512xbf16>, vector<2x512xf32> -> vector<2x512xf32>
    %70 = arith.addf %67, %69 : vector<2x512xf32>
    %71 = vector.extract_strided_slice %70 {offsets = [0, 0], sizes = [2, 128], strides = [1, 1]} : vector<2x512xf32> to vector<2x128xf32>
    %72 = arith.negf %71 : vector<2x128xf32>
    %73 = math.exp %72 : vector<2x128xf32>
    %cst_18 = arith.constant 1.000000e+00 : f32
    %74 = vector.broadcast %cst_18 : f32 to vector<2x128xf32>
    %75 = arith.addf %74, %73 : vector<2x128xf32>
    %76 = arith.divf %74, %75 : vector<2x128xf32>
    %77 = vector.extract_strided_slice %70 {offsets = [0, 128], sizes = [2, 128], strides = [1, 1]} : vector<2x512xf32> to vector<2x128xf32>
    %78 = arith.negf %77 : vector<2x128xf32>
    %79 = math.exp %78 : vector<2x128xf32>
    %cst_19 = arith.constant 1.000000e+00 : f32
    %80 = vector.broadcast %cst_19 : f32 to vector<2x128xf32>
    %81 = arith.addf %80, %79 : vector<2x128xf32>
    %82 = arith.divf %80, %81 : vector<2x128xf32>
    %83 = vector.extract_strided_slice %70 {offsets = [0, 256], sizes = [2, 128], strides = [1, 1]} : vector<2x512xf32> to vector<2x128xf32>
    %84 = math.tanh %83 : vector<2x128xf32>
    %85 = vector.extract_strided_slice %70 {offsets = [0, 384], sizes = [2, 128], strides = [1, 1]} : vector<2x512xf32> to vector<2x128xf32>
    %86 = arith.negf %85 : vector<2x128xf32>
    %87 = math.exp %86 : vector<2x128xf32>
    %cst_20 = arith.constant 1.000000e+00 : f32
    %88 = vector.broadcast %cst_20 : f32 to vector<2x128xf32>
    %89 = arith.addf %88, %87 : vector<2x128xf32>
    %90 = arith.divf %88, %89 : vector<2x128xf32>
    %91 = arith.mulf %82, %64 : vector<2x128xf32>
    %92 = arith.mulf %76, %84 : vector<2x128xf32>
    %93 = arith.addf %91, %92 : vector<2x128xf32>
    %94 = math.tanh %93 : vector<2x128xf32>
    %95 = arith.mulf %90, %94 : vector<2x128xf32>
    %96 = vector.extract_strided_slice %5 {offsets = [6, 0], sizes = [2, 512], strides = [1, 1]} : vector<16x512xf32> to vector<2x512xf32>
    %97 = arith.truncf %95 : vector<2x128xf32> to vector<2x128xbf16>
    %cst_21 = arith.constant dense<0.000000e+00> : vector<2x512xf32>
    %98 = tpu.matmul %97, %6, %cst_21 {dimension_numbers = #tpu.dot_dimension_numbers<[1], [0], [0], [1], [0, 0, 1, 1], [], []>} : vector<2x128xbf16>, vector<128x512xbf16>, vector<2x512xf32> -> vector<2x512xf32>
    %99 = arith.addf %96, %98 : vector<2x512xf32>
    %100 = vector.extract_strided_slice %99 {offsets = [0, 0], sizes = [2, 128], strides = [1, 1]} : vector<2x512xf32> to vector<2x128xf32>
    %101 = arith.negf %100 : vector<2x128xf32>
    %102 = math.exp %101 : vector<2x128xf32>
    %cst_22 = arith.constant 1.000000e+00 : f32
    %103 = vector.broadcast %cst_22 : f32 to vector<2x128xf32>
    %104 = arith.addf %103, %102 : vector<2x128xf32>
    %105 = arith.divf %103, %104 : vector<2x128xf32>
    %106 = vector.extract_strided_slice %99 {offsets = [0, 128], sizes = [2, 128], strides = [1, 1]} : vector<2x512xf32> to vector<2x128xf32>
    %107 = arith.negf %106 : vector<2x128xf32>
    %108 = math.exp %107 : vector<2x128xf32>
    %cst_23 = arith.constant 1.000000e+00 : f32
    %109 = vector.broadcast %cst_23 : f32 to vector<2x128xf32>
    %110 = arith.addf %109, %108 : vector<2x128xf32>
    %111 = arith.divf %109, %110 : vector<2x128xf32>
    %112 = vector.extract_strided_slice %99 {offsets = [0, 256], sizes = [2, 128], strides = [1, 1]} : vector<2x512xf32> to vector<2x128xf32>
    %113 = math.tanh %112 : vector<2x128xf32>
    %114 = vector.extract_strided_slice %99 {offsets = [0, 384], sizes = [2, 128], strides = [1, 1]} : vector<2x512xf32> to vector<2x128xf32>
    %115 = arith.negf %114 : vector<2x128xf32>
    %116 = math.exp %115 : vector<2x128xf32>
    %cst_24 = arith.constant 1.000000e+00 : f32
    %117 = vector.broadcast %cst_24 : f32 to vector<2x128xf32>
    %118 = arith.addf %117, %116 : vector<2x128xf32>
    %119 = arith.divf %117, %118 : vector<2x128xf32>
    %120 = arith.mulf %111, %93 : vector<2x128xf32>
    %121 = arith.mulf %105, %113 : vector<2x128xf32>
    %122 = arith.addf %120, %121 : vector<2x128xf32>
    %123 = math.tanh %122 : vector<2x128xf32>
    %124 = arith.mulf %119, %123 : vector<2x128xf32>
    %125 = vector.extract_strided_slice %5 {offsets = [8, 0], sizes = [2, 512], strides = [1, 1]} : vector<16x512xf32> to vector<2x512xf32>
    %126 = arith.truncf %124 : vector<2x128xf32> to vector<2x128xbf16>
    %cst_25 = arith.constant dense<0.000000e+00> : vector<2x512xf32>
    %127 = tpu.matmul %126, %6, %cst_25 {dimension_numbers = #tpu.dot_dimension_numbers<[1], [0], [0], [1], [0, 0, 1, 1], [], []>} : vector<2x128xbf16>, vector<128x512xbf16>, vector<2x512xf32> -> vector<2x512xf32>
    %128 = arith.addf %125, %127 : vector<2x512xf32>
    %129 = vector.extract_strided_slice %128 {offsets = [0, 0], sizes = [2, 128], strides = [1, 1]} : vector<2x512xf32> to vector<2x128xf32>
    %130 = arith.negf %129 : vector<2x128xf32>
    %131 = math.exp %130 : vector<2x128xf32>
    %cst_26 = arith.constant 1.000000e+00 : f32
    %132 = vector.broadcast %cst_26 : f32 to vector<2x128xf32>
    %133 = arith.addf %132, %131 : vector<2x128xf32>
    %134 = arith.divf %132, %133 : vector<2x128xf32>
    %135 = vector.extract_strided_slice %128 {offsets = [0, 128], sizes = [2, 128], strides = [1, 1]} : vector<2x512xf32> to vector<2x128xf32>
    %136 = arith.negf %135 : vector<2x128xf32>
    %137 = math.exp %136 : vector<2x128xf32>
    %cst_27 = arith.constant 1.000000e+00 : f32
    %138 = vector.broadcast %cst_27 : f32 to vector<2x128xf32>
    %139 = arith.addf %138, %137 : vector<2x128xf32>
    %140 = arith.divf %138, %139 : vector<2x128xf32>
    %141 = vector.extract_strided_slice %128 {offsets = [0, 256], sizes = [2, 128], strides = [1, 1]} : vector<2x512xf32> to vector<2x128xf32>
    %142 = math.tanh %141 : vector<2x128xf32>
    %143 = vector.extract_strided_slice %128 {offsets = [0, 384], sizes = [2, 128], strides = [1, 1]} : vector<2x512xf32> to vector<2x128xf32>
    %144 = arith.negf %143 : vector<2x128xf32>
    %145 = math.exp %144 : vector<2x128xf32>
    %cst_28 = arith.constant 1.000000e+00 : f32
    %146 = vector.broadcast %cst_28 : f32 to vector<2x128xf32>
    %147 = arith.addf %146, %145 : vector<2x128xf32>
    %148 = arith.divf %146, %147 : vector<2x128xf32>
    %149 = arith.mulf %140, %122 : vector<2x128xf32>
    %150 = arith.mulf %134, %142 : vector<2x128xf32>
    %151 = arith.addf %149, %150 : vector<2x128xf32>
    %152 = math.tanh %151 : vector<2x128xf32>
    %153 = arith.mulf %148, %152 : vector<2x128xf32>
    %154 = vector.extract_strided_slice %5 {offsets = [10, 0], sizes = [2, 512], strides = [1, 1]} : vector<16x512xf32> to vector<2x512xf32>
    %155 = arith.truncf %153 : vector<2x128xf32> to vector<2x128xbf16>
    %cst_29 = arith.constant dense<0.000000e+00> : vector<2x512xf32>
    %156 = tpu.matmul %155, %6, %cst_29 {dimension_numbers = #tpu.dot_dimension_numbers<[1], [0], [0], [1], [0, 0, 1, 1], [], []>} : vector<2x128xbf16>, vector<128x512xbf16>, vector<2x512xf32> -> vector<2x512xf32>
    %157 = arith.addf %154, %156 : vector<2x512xf32>
    %158 = vector.extract_strided_slice %157 {offsets = [0, 0], sizes = [2, 128], strides = [1, 1]} : vector<2x512xf32> to vector<2x128xf32>
    %159 = arith.negf %158 : vector<2x128xf32>
    %160 = math.exp %159 : vector<2x128xf32>
    %cst_30 = arith.constant 1.000000e+00 : f32
    %161 = vector.broadcast %cst_30 : f32 to vector<2x128xf32>
    %162 = arith.addf %161, %160 : vector<2x128xf32>
    %163 = arith.divf %161, %162 : vector<2x128xf32>
    %164 = vector.extract_strided_slice %157 {offsets = [0, 128], sizes = [2, 128], strides = [1, 1]} : vector<2x512xf32> to vector<2x128xf32>
    %165 = arith.negf %164 : vector<2x128xf32>
    %166 = math.exp %165 : vector<2x128xf32>
    %cst_31 = arith.constant 1.000000e+00 : f32
    %167 = vector.broadcast %cst_31 : f32 to vector<2x128xf32>
    %168 = arith.addf %167, %166 : vector<2x128xf32>
    %169 = arith.divf %167, %168 : vector<2x128xf32>
    %170 = vector.extract_strided_slice %157 {offsets = [0, 256], sizes = [2, 128], strides = [1, 1]} : vector<2x512xf32> to vector<2x128xf32>
    %171 = math.tanh %170 : vector<2x128xf32>
    %172 = vector.extract_strided_slice %157 {offsets = [0, 384], sizes = [2, 128], strides = [1, 1]} : vector<2x512xf32> to vector<2x128xf32>
    %173 = arith.negf %172 : vector<2x128xf32>
    %174 = math.exp %173 : vector<2x128xf32>
    %cst_32 = arith.constant 1.000000e+00 : f32
    %175 = vector.broadcast %cst_32 : f32 to vector<2x128xf32>
    %176 = arith.addf %175, %174 : vector<2x128xf32>
    %177 = arith.divf %175, %176 : vector<2x128xf32>
    %178 = arith.mulf %169, %151 : vector<2x128xf32>
    %179 = arith.mulf %163, %171 : vector<2x128xf32>
    %180 = arith.addf %178, %179 : vector<2x128xf32>
    %181 = math.tanh %180 : vector<2x128xf32>
    %182 = arith.mulf %177, %181 : vector<2x128xf32>
    %183 = vector.extract_strided_slice %5 {offsets = [12, 0], sizes = [2, 512], strides = [1, 1]} : vector<16x512xf32> to vector<2x512xf32>
    %184 = arith.truncf %182 : vector<2x128xf32> to vector<2x128xbf16>
    %cst_33 = arith.constant dense<0.000000e+00> : vector<2x512xf32>
    %185 = tpu.matmul %184, %6, %cst_33 {dimension_numbers = #tpu.dot_dimension_numbers<[1], [0], [0], [1], [0, 0, 1, 1], [], []>} : vector<2x128xbf16>, vector<128x512xbf16>, vector<2x512xf32> -> vector<2x512xf32>
    %186 = arith.addf %183, %185 : vector<2x512xf32>
    %187 = vector.extract_strided_slice %186 {offsets = [0, 0], sizes = [2, 128], strides = [1, 1]} : vector<2x512xf32> to vector<2x128xf32>
    %188 = arith.negf %187 : vector<2x128xf32>
    %189 = math.exp %188 : vector<2x128xf32>
    %cst_34 = arith.constant 1.000000e+00 : f32
    %190 = vector.broadcast %cst_34 : f32 to vector<2x128xf32>
    %191 = arith.addf %190, %189 : vector<2x128xf32>
    %192 = arith.divf %190, %191 : vector<2x128xf32>
    %193 = vector.extract_strided_slice %186 {offsets = [0, 128], sizes = [2, 128], strides = [1, 1]} : vector<2x512xf32> to vector<2x128xf32>
    %194 = arith.negf %193 : vector<2x128xf32>
    %195 = math.exp %194 : vector<2x128xf32>
    %cst_35 = arith.constant 1.000000e+00 : f32
    %196 = vector.broadcast %cst_35 : f32 to vector<2x128xf32>
    %197 = arith.addf %196, %195 : vector<2x128xf32>
    %198 = arith.divf %196, %197 : vector<2x128xf32>
    %199 = vector.extract_strided_slice %186 {offsets = [0, 256], sizes = [2, 128], strides = [1, 1]} : vector<2x512xf32> to vector<2x128xf32>
    %200 = math.tanh %199 : vector<2x128xf32>
    %201 = vector.extract_strided_slice %186 {offsets = [0, 384], sizes = [2, 128], strides = [1, 1]} : vector<2x512xf32> to vector<2x128xf32>
    %202 = arith.negf %201 : vector<2x128xf32>
    %203 = math.exp %202 : vector<2x128xf32>
    %cst_36 = arith.constant 1.000000e+00 : f32
    %204 = vector.broadcast %cst_36 : f32 to vector<2x128xf32>
    %205 = arith.addf %204, %203 : vector<2x128xf32>
    %206 = arith.divf %204, %205 : vector<2x128xf32>
    %207 = arith.mulf %198, %180 : vector<2x128xf32>
    %208 = arith.mulf %192, %200 : vector<2x128xf32>
    %209 = arith.addf %207, %208 : vector<2x128xf32>
    %210 = math.tanh %209 : vector<2x128xf32>
    %211 = arith.mulf %206, %210 : vector<2x128xf32>
    %212 = vector.extract_strided_slice %5 {offsets = [14, 0], sizes = [2, 512], strides = [1, 1]} : vector<16x512xf32> to vector<2x512xf32>
    %213 = arith.truncf %211 : vector<2x128xf32> to vector<2x128xbf16>
    %cst_37 = arith.constant dense<0.000000e+00> : vector<2x512xf32>
    %214 = tpu.matmul %213, %6, %cst_37 {dimension_numbers = #tpu.dot_dimension_numbers<[1], [0], [0], [1], [0, 0, 1, 1], [], []>} : vector<2x128xbf16>, vector<128x512xbf16>, vector<2x512xf32> -> vector<2x512xf32>
    %215 = arith.addf %212, %214 : vector<2x512xf32>
    %216 = vector.extract_strided_slice %215 {offsets = [0, 0], sizes = [2, 128], strides = [1, 1]} : vector<2x512xf32> to vector<2x128xf32>
    %217 = arith.negf %216 : vector<2x128xf32>
    %218 = math.exp %217 : vector<2x128xf32>
    %cst_38 = arith.constant 1.000000e+00 : f32
    %219 = vector.broadcast %cst_38 : f32 to vector<2x128xf32>
    %220 = arith.addf %219, %218 : vector<2x128xf32>
    %221 = arith.divf %219, %220 : vector<2x128xf32>
    %222 = vector.extract_strided_slice %215 {offsets = [0, 128], sizes = [2, 128], strides = [1, 1]} : vector<2x512xf32> to vector<2x128xf32>
    %223 = arith.negf %222 : vector<2x128xf32>
    %224 = math.exp %223 : vector<2x128xf32>
    %cst_39 = arith.constant 1.000000e+00 : f32
    %225 = vector.broadcast %cst_39 : f32 to vector<2x128xf32>
    %226 = arith.addf %225, %224 : vector<2x128xf32>
    %227 = arith.divf %225, %226 : vector<2x128xf32>
    %228 = vector.extract_strided_slice %215 {offsets = [0, 256], sizes = [2, 128], strides = [1, 1]} : vector<2x512xf32> to vector<2x128xf32>
    %229 = math.tanh %228 : vector<2x128xf32>
    %230 = vector.extract_strided_slice %215 {offsets = [0, 384], sizes = [2, 128], strides = [1, 1]} : vector<2x512xf32> to vector<2x128xf32>
    %231 = arith.negf %230 : vector<2x128xf32>
    %232 = math.exp %231 : vector<2x128xf32>
    %cst_40 = arith.constant 1.000000e+00 : f32
    %233 = vector.broadcast %cst_40 : f32 to vector<2x128xf32>
    %234 = arith.addf %233, %232 : vector<2x128xf32>
    %235 = arith.divf %233, %234 : vector<2x128xf32>
    %236 = arith.mulf %227, %209 : vector<2x128xf32>
    %237 = arith.mulf %221, %229 : vector<2x128xf32>
    %238 = arith.addf %236, %237 : vector<2x128xf32>
    %239 = math.tanh %238 : vector<2x128xf32>
    %240 = arith.mulf %235, %239 : vector<2x128xf32>
    %241 = vector.shape_cast %37 : vector<2x128xf32> to vector<1x2x128xf32>
    %242 = vector.shape_cast %66 : vector<2x128xf32> to vector<1x2x128xf32>
    %243 = vector.shape_cast %95 : vector<2x128xf32> to vector<1x2x128xf32>
    %244 = vector.shape_cast %124 : vector<2x128xf32> to vector<1x2x128xf32>
    %245 = vector.shape_cast %153 : vector<2x128xf32> to vector<1x2x128xf32>
    %246 = vector.shape_cast %182 : vector<2x128xf32> to vector<1x2x128xf32>
    %247 = vector.shape_cast %211 : vector<2x128xf32> to vector<1x2x128xf32>
    %248 = vector.shape_cast %240 : vector<2x128xf32> to vector<1x2x128xf32>
    %249 = tpu.concatenate %241, %242, %243, %244, %245, %246, %247, %248 in 0 : vector<1x2x128xf32>, vector<1x2x128xf32>, vector<1x2x128xf32>, vector<1x2x128xf32>, vector<1x2x128xf32>, vector<1x2x128xf32>, vector<1x2x128xf32>, vector<1x2x128xf32> -> vector<8x2x128xf32>
    %c0_41 = arith.constant 0 : index
    %c0_42 = arith.constant 0 : index
    %c0_43 = arith.constant 0 : index
    %250 = vector.load %arg4[%c0_41, %c0_42, %c0_43] : memref<8x2x128xf32, #tpu.memory_space<vmem>>, vector<8x2x128xf32>
    tpu.vector_store %arg4[%c0_41, %c0_42, %c0_43], %249 {strides = array<i32>} : memref<8x2x128xf32, #tpu.memory_space<vmem>>, vector<8x2x128xf32>,
    return
  }
}

</mosaic_0001>

<bundles_post_ra>
// kernel: encoder_lstm_forward.1
= control target key start
LH: loop header
LB: loop body
LE: loop exit
PB: predicated region body
PF: predicated region fallthrough
CT: control target
= control target key end

     0   :  { %vm75_vm0 = vcmask 1043456   ;;  %vm71_vm1 = vcmask 195584   ;;  %s2457_s1 = inlined_call_operand.vmem [shape: bf16[24,512], index: 1, kind: input, shape index: {}]   ;;  %s2458_s2 = inlined_call_operand.vmem [shape: bf16[128,512], index: 2, kind: input, shape index: {}]   ;;  %s2459_s0 = inlined_call_operand.vmem [shape: bf16[16,24], index: 0, kind: input, shape index: {}]   ;;  %s2460_s3 = inlined_call_operand.vmem [shape: f32[1,512], index: 3, kind: input, shape index: {}]   ;;  %s2461_s4 = inlined_call_operand.vmem [shape: f32[8,2,128], index: 4, kind: output, shape index: {}]  }
   0x1   :  { %v24_v0 = vld [vmem:[%s2457_s1 + $0x20] sm:$0xff]  ;;  %v25_v1 = vld [vmem:[%s2457_s1 + $0x28] sm:$0xff]  ;;  %v1612_v7 = vld [vmem:[%s2457_s1 + $0xc] sm:$0xf0] }
   0x2   :  { %v55_v2 = vunpack.c.l.b16 %v24_v0  ;;  %v56_v3 = vunpack.c.h.b16 %v24_v0  ;;  %v58_v4 = vunpack.c.h.b16 %v25_v1  ;;  %v57_v5 = vunpack.c.l.b16 %v25_v1  ;;  %v1439_v6 = vld [vmem:[%s2457_s1] sm:$0xf]  ;;  %v1610_v8 = vld [vmem:[%s2457_s1 + $0x4] sm:$0xf]  ;;  %v1441_v9 = vld [vmem:[%s2457_s1 + $0x10] sm:$0xf0] }
   0x3   :  { %v1611_v10 = vld [vmem:[%s2457_s1 + $0xc] sm:$0xf]  ;;  %v1449_v11 = vld [vmem:[%s2457_s1 + $0x18] sm:$0xf0]  ;;  %v1447_v16 = vld [vmem:[%s2457_s1 + $0x8] sm:$0xf]  ;;  %v1440_v27 = vor.u32 %v1612_v7, %v1439_v6  ;;  %v1444_v28 = vor.u32 %v1610_v8, %v1441_v9 }
   0x4   :  { %v63_v12 = vpack.c.b16 %v55_v2, %v55_v2  ;;  %v64_v13 = vpack.c.b16 %v56_v3, %v56_v3  ;;  %v66_v14 = vpack.c.b16 %v58_v4, %v58_v4  ;;  %v65_v15 = vpack.c.b16 %v57_v5, %v57_v5  ;;  %v1613_v17 = vld [vmem:[%s2457_s1 + $0x14] sm:$0xf0]  ;;  %v1571_v18 = vld [vmem:[%s2458_s2 + $0xe0] sm:$0xf]  ;;  %v1644_v19 = vld [vmem:[%s2458_s2 + $0xec] sm:$0xf0] }
   0x5   :  { %v1642_v20 = vld [vmem:[%s2458_s2 + $0xe4] sm:$0xf]  ;;  %v1573_v21 = vld [vmem:[%s2458_s2 + $0xf0] sm:$0xf0]  ;;  %v1643_v26 = vld [vmem:[%s2458_s2 + $0xec] sm:$0xf]  ;;  %v1452_v32 = vor.u32 %v1611_v10, %v1449_v11  ;;  %v1448_v33 = vor.u32 %v1613_v17, %v1447_v16  ;;  %v1859_v34 = vor.u32 %v1644_v19, %v1571_v18 }
   0x6   :  { %v77_v22 = vsel %vm75_vm0, %v63_v12, 0  ;;  %v80_v23 = vsel %vm75_vm0, %v64_v13, 0  ;;  %v86_v24 = vsel %vm75_vm0, %v66_v14, 0  ;;  %v83_v25 = vsel %vm75_vm0, %v65_v15, 0  ;;  %v1581_v29 = vld [vmem:[%s2458_s2 + $0xf8] sm:$0xf0] }
   0x7   :  { %94 = vmatpush.bf16.msra.mxu0 %v77_v22  ;;  %108 = vmatpush.bf16.msra.mxu1 %v80_v23  ;;  %v1579_v30 = vld [vmem:[%s2458_s2 + $0xe8] sm:$0xf]  ;;  %v1645_v31 = vld [vmem:[%s2458_s2 + $0xf4] sm:$0xf0]  ;;  %v1861_v35 = vor.u32 %v1642_v20, %v1573_v21  ;;  %v1555_v36 = vld [vmem:[%s2458_s2 + $0xc0] sm:$0xf]  ;;  %v1872_v39 = vor.u32 %v1643_v26, %v1581_v29 }
   0x8   :  { %136 = vmatpush.bf16.msra.mxu3 %v86_v24  ;;  %122 = vmatpush.bf16.msra.mxu2 %v83_v25  ;;  %v1640_v37 = vld [vmem:[%s2458_s2 + $0xcc] sm:$0xf0]  ;;  %v1638_v38 = vld [vmem:[%s2458_s2 + $0xc4] sm:$0xf]  ;;  %v1874_v40 = vor.u32 %v1645_v31, %v1579_v30  ;;  %v1557_v41 = vld [vmem:[%s2458_s2 + $0xd0] sm:$0xf0] }
   0x9   :  { %v1639_v42 = vld [vmem:[%s2458_s2 + $0xcc] sm:$0xf]  ;;  %v1565_v43 = vld [vmem:[%s2458_s2 + $0xd8] sm:$0xf0]  ;;  %v1563_v44 = vld [vmem:[%s2458_s2 + $0xc8] sm:$0xf]  ;;  %v1896_v47 = vor.u32 %v1640_v37, %v1555_v36  ;;  %v1898_v48 = vor.u32 %v1638_v38, %v1557_v41 }
   0xa   :  { %v1641_v45 = vld [vmem:[%s2458_s2 + $0xd4] sm:$0xf0]  ;;  %v1609_v46 = vld [vmem:[%s2459_s0] sm:$0xff]  ;;  %v1636_v50 = vld [vmem:[%s2458_s2 + $0xac] sm:$0xf0]  ;;  %v1908_v51 = vor.u32 %v1639_v42, %v1565_v43 }
   0xb   :  { %95 = vmatpush.bf16.msra.mxu0 %v1440_v27  ;;  %109 = vmatpush.bf16.msra.mxu1 %v1444_v28  ;;  %v1539_v49 = vld [vmem:[%s2458_s2 + $0xa0] sm:$0xf]  ;;  %v1910_v52 = vor.u32 %v1641_v45, %v1563_v44  ;;  %v1634_v53 = vld [vmem:[%s2458_s2 + $0xa4] sm:$0xf]  ;;  %v1541_v54 = vld [vmem:[%s2458_s2 + $0xb0] sm:$0xf0] }
   0xc   :  { %137 = vmatpush.bf16.msra.mxu3 %v1452_v32  ;;  %123 = vmatpush.bf16.msra.mxu2 %v1448_v33  ;;  %v1635_v55 = vld [vmem:[%s2458_s2 + $0xac] sm:$0xf]  ;;  %v1549_v56 = vld [vmem:[%s2458_s2 + $0xb8] sm:$0xf0]  ;;  %v1547_v57 = vld [vmem:[%s2458_s2 + $0xa8] sm:$0xf]  ;;  %v1936_v59 = vor.u32 %v1636_v50, %v1539_v49  ;;  %v1938_v60 = vor.u32 %v1634_v53, %v1541_v54 }
   0xd   :  { %v1637_v58 = vld [vmem:[%s2458_s2 + $0xb4] sm:$0xf0]  ;;  %v1523_v61 = vld [vmem:[%s2458_s2 + $0x80] sm:$0xf]  ;;  %v1632_v62 = vld [vmem:[%s2458_s2 + $0x8c] sm:$0xf0]  ;;  %v1948_v63 = vor.u32 %v1635_v55, %v1549_v56 }
   0xe   :  { %1453 = vmatmul.msk.bf16.vlgmr.msra.gmra.mxu0 %vm71_vm1, %v1609_v46  ;;  %1454 = vmatmul.msk.bf16.vlgmr.msra.gmra.mxu1 %vm71_vm1, %v1609_v46  ;;  %v1950_v0 = vor.u32 %v1637_v58, %v1547_v57  ;;  %v1630_v1 = vld [vmem:[%s2458_s2 + $0x84] sm:$0xf]  ;;  %v1525_v2 = vld [vmem:[%s2458_s2 + $0x90] sm:$0xf0]  ;;  %v1631_v3 = vld [vmem:[%s2458_s2 + $0x8c] sm:$0xf]  ;;  %v1972_v7 = vor.u32 %v1632_v62, %v1523_v61 }
   0xf   :  { %336 = vmatpush.bf16.msrb.mxu0 %v1859_v34  ;;  %349 = vmatpush.bf16.msrb.mxu1 %v1861_v35  ;;  %v1533_v4 = vld [vmem:[%s2458_s2 + $0x98] sm:$0xf0]  ;;  %v1531_v5 = vld [vmem:[%s2458_s2 + $0x88] sm:$0xf]  ;;  %v1633_v6 = vld [vmem:[%s2458_s2 + $0x94] sm:$0xf0]  ;;  %v1974_v8 = vor.u32 %v1630_v1, %v1525_v2 }
  0x10   :  { %375 = vmatpush.bf16.msrb.mxu3 %v1872_v39  ;;  %362 = vmatpush.bf16.msrb.mxu2 %v1874_v40  ;;  %v1507_v9 = vld [vmem:[%s2458_s2 + $0x60] sm:$0xf]  ;;  %v1628_v10 = vld [vmem:[%s2458_s2 + $0x6c] sm:$0xf0]  ;;  %v1984_v11 = vor.u32 %v1631_v3, %v1533_v4  ;;  %v1986_v12 = vor.u32 %v1633_v6, %v1531_v5  ;;  %v1626_v13 = vld [vmem:[%s2458_s2 + $0x64] sm:$0xf] }
  0x11   :  { %1456 = vmatmul.msk.bf16.vlgmr.msra.gmra.mxu3 %vm71_vm1, %v1609_v46  ;;  %1455 = vmatmul.msk.bf16.vlgmr.msra.gmra.mxu2 %vm71_vm1, %v1609_v46  ;;  %v1509_v14 = vld [vmem:[%s2458_s2 + $0x70] sm:$0xf0]  ;;  %v1627_v15 = vld [vmem:[%s2458_s2 + $0x6c] sm:$0xf]  ;;  %v1517_v16 = vld [vmem:[%s2458_s2 + $0x78] sm:$0xf0]  ;;  %v2008_v19 = vor.u32 %v1628_v10, %v1507_v9 }
  0x12   :  { %v1515_v17 = vld [vmem:[%s2458_s2 + $0x68] sm:$0xf]  ;;  %v1629_v18 = vld [vmem:[%s2458_s2 + $0x74] sm:$0xf0]  ;;  %v2010_v20 = vor.u32 %v1626_v13, %v1509_v14  ;;  %v1491_v21 = vld [vmem:[%s2458_s2 + $0x40] sm:$0xf]  ;;  %v2020_v23 = vor.u32 %v1627_v15, %v1517_v16 }
  0x13   :  { %337 = vmatpush.bf16.msrb.mxu0 %v1896_v47  ;;  %350 = vmatpush.bf16.msrb.mxu1 %v1898_v48  ;;  %v1624_v22 = vld [vmem:[%s2458_s2 + $0x4c] sm:$0xf0]  ;;  %v2022_v24 = vor.u32 %v1629_v18, %v1515_v17  ;;  %v1622_v25 = vld [vmem:[%s2458_s2 + $0x44] sm:$0xf]  ;;  %v1493_v26 = vld [vmem:[%s2458_s2 + $0x50] sm:$0xf0] }
  0x14   :  { %376 = vmatpush.bf16.msrb.mxu3 %v1908_v51  ;;  %363 = vmatpush.bf16.msrb.mxu2 %v1910_v52  ;;  %v1623_v27 = vld [vmem:[%s2458_s2 + $0x4c] sm:$0xf]  ;;  %v1501_v28 = vld [vmem:[%s2458_s2 + $0x58] sm:$0xf0]  ;;  %v1499_v29 = vld [vmem:[%s2458_s2 + $0x48] sm:$0xf]  ;;  %v2044_v31 = vor.u32 %v1624_v22, %v1491_v21  ;;  %v2046_v32 = vor.u32 %v1622_v25, %v1493_v26 }
  0x15   :  { %v1625_v30 = vld [vmem:[%s2458_s2 + $0x54] sm:$0xf0]  ;;  %v1475_v33 = vld [vmem:[%s2458_s2 + $0x20] sm:$0xf]  ;;  %v1620_v36 = vld [vmem:[%s2458_s2 + $0x2c] sm:$0xf0]  ;;  %v2056_v37 = vor.u32 %v1623_v27, %v1501_v28 }
  0x16   :  { %v2058_v38 = vor.u32 %v1625_v30, %v1499_v29  ;;  %v1618_v41 = vld [vmem:[%s2458_s2 + $0x24] sm:$0xf]  ;;  %v1477_v42 = vld [vmem:[%s2458_s2 + $0x30] sm:$0xf0]  ;;  %v1619_v43 = vld [vmem:[%s2458_s2 + $0x2c] sm:$0xf]  ;;  %v2080_v49 = vor.u32 %v1620_v36, %v1475_v33 }
  0x17   :  { %338 = vmatpush.bf16.msrb.mxu0 %v1936_v59  ;;  %351 = vmatpush.bf16.msrb.mxu1 %v1938_v60  ;;  %v1485_v44 = vld [vmem:[%s2458_s2 + $0x38] sm:$0xf0]  ;;  %v1483_v45 = vld [vmem:[%s2458_s2 + $0x28] sm:$0xf]  ;;  %v1621_v46 = vld [vmem:[%s2458_s2 + $0x34] sm:$0xf0]  ;;  %v2082_v50 = vor.u32 %v1618_v41, %v1477_v42 }
  0x18   :  { %377 = vmatpush.bf16.msrb.mxu3 %v1948_v63  ;;  %364 = vmatpush.bf16.msrb.mxu2 %v1950_v0  ;;  %v1459_v53 = vld [vmem:[%s2458_s2] sm:$0xf]  ;;  %v1616_v54 = vld [vmem:[%s2458_s2 + $0xc] sm:$0xf0]  ;;  %v2092_v55 = vor.u32 %v1619_v43, %v1485_v44  ;;  %v2094_v56 = vor.u32 %v1621_v46, %v1483_v45  ;;  %v1614_v57 = vld [vmem:[%s2458_s2 + $0x4] sm:$0xf] }
  0x19   :  { %v1461_v58 = vld [vmem:[%s2458_s2 + $0x10] sm:$0xf0]  ;;  %v1615_v61 = vld [vmem:[%s2458_s2 + $0xc] sm:$0xf]  ;;  %v1469_v62 = vld [vmem:[%s2458_s2 + $0x18] sm:$0xf0]  ;;  %v2116_v3 = vor.u32 %v1616_v54, %v1459_v53 }
  0x1a   :  { %v1467_v1 = vld [vmem:[%s2458_s2 + $0x8] sm:$0xf]  ;;  %v1617_v2 = vld [vmem:[%s2458_s2 + $0x14] sm:$0xf0]  ;;  %v2118_v4 = vor.u32 %v1614_v57, %v1461_v58  ;;  %v2122_v5 = vor.u32 %v1615_v61, %v1469_v62  ;;  %v1775_v9 = vmov 0  }
  0x1b   :  { %339 = vmatpush.bf16.msrb.mxu0 %v1972_v7  ;;  %352 = vmatpush.bf16.msrb.mxu1 %v1974_v8  ;;  %v2124_v6 = vor.u32 %v1617_v2, %v1467_v1  ;;  %v26_v14 = vld [vmem:[%s2460_s3] sm:$0xf] }
  0x1c   :  { %378 = vmatpush.bf16.msrb.mxu3 %v1984_v11  ;;  %365 = vmatpush.bf16.msrb.mxu2 %v1986_v12  ;;  %v28_v15 = vperm.slane %v26_v14, 0  ;;  %v29_v16 = vperm.slane %v26_v14, 1  ;;  %v31_v27 = vperm.slane %v26_v14, 3  ;;  %v30_v28 = vperm.slane %v26_v14, 2 }
  0x1f   :  { %340 = vmatpush.bf16.msrb.mxu0 %v2008_v19  ;;  %353 = vmatpush.bf16.msrb.mxu1 %v2010_v20 }
  0x20   :  { %379 = vmatpush.bf16.msrb.mxu3 %v2020_v23  ;;  %366 = vmatpush.bf16.msrb.mxu2 %v2022_v24 }
  0x23   :  { %341 = vmatpush.bf16.msrb.mxu0 %v2044_v31  ;;  %354 = vmatpush.bf16.msrb.mxu1 %v2046_v32 }
  0x24   :  { %380 = vmatpush.bf16.msrb.mxu3 %v2056_v37  ;;  %367 = vmatpush.bf16.msrb.mxu2 %v2058_v38 }
  0x27   :  { %342 = vmatpush.bf16.msrb.mxu0 %v2080_v49  ;;  %355 = vmatpush.bf16.msrb.mxu1 %v2082_v50 }
  0x28   :  { %381 = vmatpush.bf16.msrb.mxu3 %v2092_v55  ;;  %368 = vmatpush.bf16.msrb.mxu2 %v2094_v56 }
  0x2b   :  { %343 = vmatpush.bf16.msrb.mxu0 %v2116_v3  ;;  %356 = vmatpush.bf16.msrb.mxu1 %v2118_v4 }
  0x2c   :  { %382 = vmatpush.bf16.msrb.mxu3 %v2122_v5  ;;  %369 = vmatpush.bf16.msrb.mxu2 %v2124_v6 }
  0x2e   :  { %344 = vmatmul.bf16.vlgmr.msrb.gmra.mxu0 %v1775_v9  ;;  %357 = vmatmul.bf16.vlgmr.msrb.gmra.mxu1 %v1775_v9 }
  0x2f   :  { %456 = vmatpush.bf16.msra.mxu0 %v1859_v34  ;;  %469 = vmatpush.bf16.msra.mxu1 %v1861_v35 }
  0x30   :  { %383 = vmatmul.bf16.vlgmr.msrb.gmra.mxu3 %v1775_v9  ;;  %370 = vmatmul.bf16.vlgmr.msrb.gmra.mxu2 %v1775_v9 }
  0x31   :  { %482 = vmatpush.bf16.msra.mxu2 %v1874_v40  ;;  %495 = vmatpush.bf16.msra.mxu3 %v1872_v39 }
  0x33   :  { %457 = vmatpush.bf16.msra.mxu0 %v1896_v47  ;;  %470 = vmatpush.bf16.msra.mxu1 %v1898_v48 }
  0x35   :  { %483 = vmatpush.bf16.msra.mxu2 %v1910_v52  ;;  %496 = vmatpush.bf16.msra.mxu3 %v1908_v51 }
  0x37   :  { %458 = vmatpush.bf16.msra.mxu0 %v1936_v59  ;;  %471 = vmatpush.bf16.msra.mxu1 %v1938_v60 }
  0x39   :  { %484 = vmatpush.bf16.msra.mxu2 %v1950_v0  ;;  %497 = vmatpush.bf16.msra.mxu3 %v1948_v63 }
  0x3b   :  { %459 = vmatpush.bf16.msra.mxu0 %v1972_v7  ;;  %472 = vmatpush.bf16.msra.mxu1 %v1974_v8 }
  0x3d   :  { %485 = vmatpush.bf16.msra.mxu2 %v1986_v12  ;;  %498 = vmatpush.bf16.msra.mxu3 %v1984_v11 }
  0x3f   :  { %460 = vmatpush.bf16.msra.mxu0 %v2008_v19  ;;  %473 = vmatpush.bf16.msra.mxu1 %v2010_v20 }
  0x41   :  { %486 = vmatpush.bf16.msra.mxu2 %v2022_v24  ;;  %499 = vmatpush.bf16.msra.mxu3 %v2020_v23 }
  0x43   :  { %461 = vmatpush.bf16.msra.mxu0 %v2044_v31  ;;  %474 = vmatpush.bf16.msra.mxu1 %v2046_v32 }
  0x45   :  { %487 = vmatpush.bf16.msra.mxu2 %v2058_v38  ;;  %500 = vmatpush.bf16.msra.mxu3 %v2056_v37 }
  0x47   :  { %462 = vmatpush.bf16.msra.mxu0 %v2080_v49  ;;  %475 = vmatpush.bf16.msra.mxu1 %v2082_v50 }
  0x49   :  { %488 = vmatpush.bf16.msra.mxu2 %v2094_v56  ;;  %501 = vmatpush.bf16.msra.mxu3 %v2092_v55 }
  0x4b   :  { %463 = vmatpush.bf16.msra.mxu0 %v2116_v3  ;;  %476 = vmatpush.bf16.msra.mxu1 %v2118_v4 }
  0x4d   :  { %489 = vmatpush.bf16.msra.mxu2 %v2124_v6  ;;  %502 = vmatpush.bf16.msra.mxu3 %v2122_v5 }
  0x4f   :  { %594 = vmatpush.bf16.msrb.mxu0 %v1859_v34  ;;  %607 = vmatpush.bf16.msrb.mxu1 %v1861_v35 }
  0x51   :  { %620 = vmatpush.bf16.msrb.mxu2 %v1874_v40  ;;  %633 = vmatpush.bf16.msrb.mxu3 %v1872_v39 }
  0x53   :  { %595 = vmatpush.bf16.msrb.mxu0 %v1896_v47  ;;  %608 = vmatpush.bf16.msrb.mxu1 %v1898_v48 }
  0x55   :  { %621 = vmatpush.bf16.msrb.mxu2 %v1910_v52  ;;  %634 = vmatpush.bf16.msrb.mxu3 %v1908_v51 }
  0x57   :  { %596 = vmatpush.bf16.msrb.mxu0 %v1936_v59  ;;  %609 = vmatpush.bf16.msrb.mxu1 %v1938_v60 }
  0x59   :  { %622 = vmatpush.bf16.msrb.mxu2 %v1950_v0  ;;  %635 = vmatpush.bf16.msrb.mxu3 %v1948_v63 }
  0x5b   :  { %597 = vmatpush.bf16.msrb.mxu0 %v1972_v7  ;;  %610 = vmatpush.bf16.msrb.mxu1 %v1974_v8 }
  0x5d   :  { %623 = vmatpush.bf16.msrb.mxu2 %v1986_v12  ;;  %636 = vmatpush.bf16.msrb.mxu3 %v1984_v11 }
  0x5f   :  { %598 = vmatpush.bf16.msrb.mxu0 %v2008_v19  ;;  %611 = vmatpush.bf16.msrb.mxu1 %v2010_v20 }
  0x61   :  { %624 = vmatpush.bf16.msrb.mxu2 %v2022_v24  ;;  %637 = vmatpush.bf16.msrb.mxu3 %v2020_v23 }
  0x63   :  { %599 = vmatpush.bf16.msrb.mxu0 %v2044_v31  ;;  %612 = vmatpush.bf16.msrb.mxu1 %v2046_v32 }
  0x65   :  { %625 = vmatpush.bf16.msrb.mxu2 %v2058_v38  ;;  %638 = vmatpush.bf16.msrb.mxu3 %v2056_v37 }
  0x67   :  { %600 = vmatpush.bf16.msrb.mxu0 %v2080_v49  ;;  %613 = vmatpush.bf16.msrb.mxu1 %v2082_v50 }
  0x69   :  { %626 = vmatpush.bf16.msrb.mxu2 %v2094_v56  ;;  %639 = vmatpush.bf16.msrb.mxu3 %v2092_v55 }
  0x6b   :  { %601 = vmatpush.bf16.msrb.mxu0 %v2116_v3  ;;  %614 = vmatpush.bf16.msrb.mxu1 %v2118_v4 }
  0x6d   :  { %627 = vmatpush.bf16.msrb.mxu2 %v2124_v6  ;;  %640 = vmatpush.bf16.msrb.mxu3 %v2122_v5 }
  0x8b   :  { %v97_v10 = vpop.f32.mrf.mxu0  ;;  %v111_v13 = vpop.f32.mrf.mxu1 }
  0x8c   :  { %v2205_v41 = vadd.f32 %v97_v10, %v28_v15  ;;  %v2207_v42 = vadd.f32 %v111_v13, %v29_v16 }
  0x93   :  { %v99_v21 = vpop.f32.mrf.mxu0  ;;  %v113_v22 = vpop.f32.mrf.mxu1 }
  0x94   :  { %v139_v17 = vpop.f32.mrf.mxu3  ;;  %v125_v18 = vpop.f32.mrf.mxu2  ;;  %v2197_v25 = vadd.f32 %v99_v21, %v28_v15  ;;  %v2199_v26 = vadd.f32 %v113_v22, %v29_v16 }
  0x95   :  { %v2211_v57 = vadd.f32 %v139_v17, %v31_v27  ;;  %v2214_v22 = vadd.f32 %v125_v18, %v30_v28 }
  0x9c   :  { %v141_v29 = vpop.f32.mrf.mxu3  ;;  %v127_v30 = vpop.f32.mrf.mxu2 }
  0x9d   :  { %v2201_v33 = vadd.f32 %v141_v29, %v31_v27  ;;  %v2203_v36 = vadd.f32 %v127_v30, %v30_v28 }
  0x9f   :  { %2464 = vst [vmem:[#allocation2_spill] sm:$0xff] %v2201_v33 }
  0xa0   :  { %2465 = vst [vmem:[#allocation3_spill] sm:$0xff] %v2203_v36 }
  0xab   :  { %v345_v43 = vpop.f32.mrf.mxu0  ;;  %v358_v44 = vpop.f32.mrf.mxu1 }
  0xac   :  { %v388_v45 = vadd.f32 %v345_v43, %v2205_v41  ;;  %v389_v46 = vadd.f32 %v358_v44, %v2207_v42 }
  0xae   :  { %v1585_v53 = vmul.f32 -1.442695, %v388_v45  ;;  %v1586_v54 = vmul.f32 -1.442695, %v389_v46 }
  0xb0   :  { %1647 = vpow2.f32 %v1585_v53 }
  0xb1   :  { %1649 = vpow2.f32 %v1586_v54 }
  0xb3   :  { %v384_v58 = vpop.f32.mrf.mxu3  ;;  %v371_v61 = vpop.f32.mrf.mxu2 }
  0xb4   :  { %v391_v62 = vadd.f32 %v384_v58, %v2211_v57  ;;  %v347_v1 = vpop.f32.mrf.mxu0  ;;  %v360_v2 = vpop.f32.mrf.mxu1  ;;  %v390_v30 = vadd.f32 %v371_v61, %v2214_v22 }
  0xb6   :  { %v1587_v9 = vmul.f32 -1.442695, %v391_v62  ;;  %v1648_v10 = vpop.eup %1647 }
  0xb7   :  { %v1650_v13 = vpop.eup %1649  ;;  %v395_v14 = vadd.f32 1.0, %v1648_v10 }
  0xb8   :  { %1651 = vpow2.f32 %v1587_v9  ;;  %v414_v15 = vadd.f32 1.0, %v1650_v13 }
  0xb9   :  { %1653 = vrcp.f32 %v395_v14  ;;  %v407_v54 = vand.u32 2147483648, %v395_v14  ;;  %v405_v1 = vand.u32 2147483647, %v395_v14  ;;  %vm401_vm4 = vweird.f32 %v395_v14 }
  0xba   :  { %1655 = vrcp.f32 %v414_v15  ;;  %v426_v58 = vand.u32 2147483648, %v414_v15  ;;  %v424_v18 = vand.u32 2147483647, %v414_v15  ;;  %vm420_vm5 = vweird.f32 %v414_v15 }
  0xbb   :  { %v386_v16 = vpop.f32.mrf.mxu3  ;;  %v373_v21 = vpop.f32.mrf.mxu2  ;;  %v408_v10 = vor.u32 1.1754944e-38, %v407_v54  ;;  %vm406_vm7 = vcmp.eq.f32.partialorder %v405_v1, 8.507059e+37 }
  0xbc   :  { %v427_v16 = vor.u32 1.1754944e-38, %v426_v58  ;;  %vm425_vm9 = vcmp.eq.f32.partialorder %v424_v18, 8.507059e+37 }
  0xbe   :  { %v1652_v17 = vpop.eup %1651 }
  0xbf   :  { %v434_v27 = vadd.f32 1.0, %v1652_v17  ;;  %v1654_v29 = vpop.eup %1653 }
  0xc0   :  { %v1656_v43 = vpop.eup %1655  ;;  %v397_v44 = vmul.f32 %v1654_v29, %v395_v14  ;;  %vm402_vm2 = vweird.f32 %v1654_v29 }
  0xc1   :  { %1657 = vrcp.f32 %v434_v27  ;;  %v416_v45 = vmul.f32 %v1656_v43, %v414_v15  ;;  %vm421_vm3 = vweird.f32 %v1656_v43  ;;  %vm403_vm6 = vmor %vm401_vm4, %vm402_vm2  ;;  %v446_v15 = vand.u32 2147483648, %v434_v27 }
  0xc2   :  { %v398_v46 = vsub.f32 1.0, %v397_v44  ;;  %1659 = vtanh.f32 %v390_v30  ;;  %vm422_vm8 = vmor %vm420_vm5, %vm421_vm3  ;;  %vm440_vm11 = vweird.f32 %v434_v27 }
  0xc3   :  { %v417_v53 = vsub.f32 1.0, %v416_v45  ;;  %v447_v58 = vor.u32 1.1754944e-38, %v446_v15 }
  0xc4   :  { %v399_v62 = vmul.f32 %v1654_v29, %v398_v46 }
  0xc5   :  { %v418_v2 = vmul.f32 %v1656_v43, %v417_v53 }
  0xc6   :  { %v400_v9 = vadd.f32 %v1654_v29, %v399_v62 }
  0xc7   :  { %v1658_v28 = vpop.eup %1657  ;;  %v419_v13 = vadd.f32 %v1656_v43, %v418_v2 }
  0xc8   :  { %v436_v61 = vmul.f32 %v1658_v28, %v434_v27  ;;  %v404_v21 = vsel %vm403_vm6, %v1654_v29, %v400_v9  ;;  %v1660_v17 = vpop.eup %1659  ;;  %vm441_vm10 = vweird.f32 %v1658_v28  ;;  %v444_v29 = vand.u32 2147483647, %v434_v27 }
  0xc9   :  { %v409_v44 = vsel %vm406_vm7, %v408_v10, %v404_v21  ;;  %v423_v45 = vsel %vm422_vm8, %v1656_v43, %v419_v13  ;;  %vm442_vm12 = vmor %vm440_vm11, %vm441_vm10 }
  0xca   :  { %v437_v30 = vsub.f32 1.0, %v436_v61  ;;  %v428_v46 = vsel %vm425_vm9, %v427_v16, %v423_v45  ;;  %v451_v53 = vmul.f32 %v1660_v17, %v409_v44  ;;  %vm445_vm13 = vcmp.eq.f32.partialorder %v444_v29, 8.507059e+37 }
  0xcb   :  { %v450_v33 = vmul.f32 0.0, %v428_v46 }
  0xcc   :  { %v438_v36 = vmul.f32 %v1658_v28, %v437_v30 }
  0xcd   :  { %v2217_v62 = vadd.f32 %v451_v53, %v450_v33 }
  0xce   :  { %v439_v14 = vadd.f32 %v1658_v28, %v438_v36 }
  0xcf   :  { %1661 = vtanh.f32 %v2217_v62 }
  0xd0   :  { %v443_v54 = vsel %vm442_vm12, %v1658_v28, %v439_v14 }
  0xd1   :  { %v448_v43 = vsel %vm445_vm13, %v447_v58, %v443_v54 }
  0xd5   :  { %v1662_v1 = vpop.eup %1661 }
  0xd6   :  { %v454_v2 = vmul.f32 %v1662_v1, %v448_v43 }
  0xd8   :  { %v455_v18 = vpack.c.bf16 %v454_v2, %v454_v2  ;;  %1421 = vst [vmem:[%s2461_s4] sm:$0x3] %v454_v2 }
  0xda   :  { %464 = vmatmul.bf16.vlgmr.msra.gmra.mxu0 %v455_v18  ;;  %477 = vmatmul.bf16.vlgmr.msra.gmra.mxu1 %v455_v18 }
  0xdb   :  { %490 = vmatmul.bf16.vlgmr.msra.gmra.mxu2 %v455_v18  ;;  %503 = vmatmul.bf16.vlgmr.msra.gmra.mxu3 %v455_v18 }
  0xdc   :  { %732 = vmatpush.bf16.msra.mxu0 %v1859_v34  ;;  %745 = vmatpush.bf16.msra.mxu1 %v1861_v35 }
  0xdd   :  { %758 = vmatpush.bf16.msra.mxu2 %v1874_v40  ;;  %771 = vmatpush.bf16.msra.mxu3 %v1872_v39 }
  0xe0   :  { %733 = vmatpush.bf16.msra.mxu0 %v1896_v47  ;;  %746 = vmatpush.bf16.msra.mxu1 %v1898_v48 }
  0xe1   :  { %759 = vmatpush.bf16.msra.mxu2 %v1910_v52  ;;  %772 = vmatpush.bf16.msra.mxu3 %v1908_v51 }
  0xe4   :  { %734 = vmatpush.bf16.msra.mxu0 %v1936_v59  ;;  %747 = vmatpush.bf16.msra.mxu1 %v1938_v60 }
  0xe5   :  { %760 = vmatpush.bf16.msra.mxu2 %v1950_v0  ;;  %773 = vmatpush.bf16.msra.mxu3 %v1948_v63 }
  0xe8   :  { %735 = vmatpush.bf16.msra.mxu0 %v1972_v7  ;;  %748 = vmatpush.bf16.msra.mxu1 %v1974_v8 }
  0xe9   :  { %761 = vmatpush.bf16.msra.mxu2 %v1986_v12  ;;  %774 = vmatpush.bf16.msra.mxu3 %v1984_v11 }
  0xec   :  { %736 = vmatpush.bf16.msra.mxu0 %v2008_v19  ;;  %749 = vmatpush.bf16.msra.mxu1 %v2010_v20 }
  0xed   :  { %762 = vmatpush.bf16.msra.mxu2 %v2022_v24  ;;  %775 = vmatpush.bf16.msra.mxu3 %v2020_v23 }
  0xf0   :  { %737 = vmatpush.bf16.msra.mxu0 %v2044_v31  ;;  %750 = vmatpush.bf16.msra.mxu1 %v2046_v32 }
  0xf1   :  { %763 = vmatpush.bf16.msra.mxu2 %v2058_v38  ;;  %776 = vmatpush.bf16.msra.mxu3 %v2056_v37 }
  0xf4   :  { %738 = vmatpush.bf16.msra.mxu0 %v2080_v49  ;;  %751 = vmatpush.bf16.msra.mxu1 %v2082_v50 }
  0xf5   :  { %764 = vmatpush.bf16.msra.mxu2 %v2094_v56  ;;  %777 = vmatpush.bf16.msra.mxu3 %v2092_v55 }
  0xf8   :  { %739 = vmatpush.bf16.msra.mxu0 %v2116_v3  ;;  %752 = vmatpush.bf16.msra.mxu1 %v2118_v4 }
  0xf9   :  { %765 = vmatpush.bf16.msra.mxu2 %v2124_v6  ;;  %778 = vmatpush.bf16.msra.mxu3 %v2122_v5 }
 0x157   :  { %v465_v33 = vpop.f32.mrf.mxu0  ;;  %v478_v36 = vpop.f32.mrf.mxu1 }
 0x158   :  { %v512_v27 = vrot.slane %v465_v33, 6  ;;  %v513_v28 = vrot.slane %v478_v36, 6 }
 0x15a   :  { %v520_v9 = vadd.f32 %v512_v27, %v2205_v41  ;;  %v521_v61 = vadd.f32 %v513_v28, %v2207_v42 }
 0x15c   :  { %v1588_v10 = vmul.f32 -1.442695, %v520_v9  ;;  %v1589_v13 = vmul.f32 -1.442695, %v521_v61 }
 0x15e   :  { %1663 = vpow2.f32 %v1588_v10  ;;  %v491_v16 = vpop.f32.mrf.mxu2  ;;  %v504_v21 = vpop.f32.mrf.mxu3 }
 0x15f   :  { %1665 = vpow2.f32 %v1589_v13  ;;  %v515_v17 = vrot.slane %v504_v21, 6  ;;  %v467_v30 = vpop.f32.mrf.mxu0  ;;  %v480_v44 = vpop.f32.mrf.mxu1  ;;  %v514_v1 = vrot.slane %v491_v16, 6 }
 0x161   :  { %v523_v45 = vadd.f32 %v515_v17, %v2211_v57  ;;  %v522_v33 = vadd.f32 %v514_v1, %v2214_v22 }
 0x163   :  { %v1590_v46 = vmul.f32 -1.442695, %v523_v45 }
 0x164   :  { %v1664_v53 = vpop.eup %1663 }
 0x165   :  { %v1666_v14 = vpop.eup %1665  ;;  %v527_v15 = vadd.f32 1.0, %v1664_v53  ;;  %1667 = vpow2.f32 %v1590_v46 }
 0x166   :  { %v546_v29 = vadd.f32 1.0, %v1666_v14  ;;  %v493_v54 = vpop.f32.mrf.mxu2  ;;  %v506_v58 = vpop.f32.mrf.mxu3 }
 0x167   :  { %1669 = vrcp.f32 %v527_v15  ;;  %v539_v10 = vand.u32 2147483648, %v527_v15  ;;  %v537_v17 = vand.u32 2147483647, %v527_v15  ;;  %vm533_vm0 = vweird.f32 %v527_v15 }
 0x168   :  { %1671 = vrcp.f32 %v546_v29  ;;  %v558_v13 = vand.u32 2147483648, %v546_v29  ;;  %v556_v16 = vand.u32 2147483647, %v546_v29  ;;  %vm552_vm1 = vweird.f32 %v546_v29 }
 0x169   :  { %v540_v46 = vor.u32 1.1754944e-38, %v539_v10  ;;  %v583_v54 = vrot.slane %v2217_v62, 6  ;;  %vm538_vm4 = vcmp.eq.f32.partialorder %v537_v17, 8.507059e+37 }
 0x16a   :  { %v559_v58 = vor.u32 1.1754944e-38, %v558_v13  ;;  %vm557_vm5 = vcmp.eq.f32.partialorder %v556_v16, 8.507059e+37 }
 0x16b   :  { %v1668_v43 = vpop.eup %1667 }
 0x16c   :  { %v566_v2 = vadd.f32 1.0, %v1668_v43 }
 0x16d   :  { %v1670_v18 = vpop.eup %1669 }
 0x16e   :  { %v1672_v36 = vpop.eup %1671  ;;  %v529_v27 = vmul.f32 %v1670_v18, %v527_v15  ;;  %1673 = vrcp.f32 %v566_v2  ;;  %vm534_vm14 = vweird.f32 %v1670_v18  ;;  %v578_v62 = vand.u32 2147483648, %v566_v2 }
 0x16f   :  { %v548_v28 = vmul.f32 %v1672_v36, %v546_v29  ;;  %1675 = vtanh.f32 %v522_v33  ;;  %vm553_vm15 = vweird.f32 %v1672_v36  ;;  %vm535_vm2 = vmor %vm533_vm0, %vm534_vm14  ;;  %vm572_vm7 = vweird.f32 %v566_v2 }
 0x170   :  { %v530_v9 = vsub.f32 1.0, %v529_v27  ;;  %vm554_vm3 = vmor %vm552_vm1, %vm553_vm15  ;;  %v576_v13 = vand.u32 2147483647, %v566_v2  ;;  %v579_v17 = vor.u32 1.1754944e-38, %v578_v62 }
 0x171   :  { %v549_v61 = vsub.f32 1.0, %v548_v28 }
 0x172   :  { %v531_v21 = vmul.f32 %v1670_v18, %v530_v9  ;;  %vm577_vm9 = vcmp.eq.f32.partialorder %v576_v13, 8.507059e+37 }
 0x173   :  { %v550_v30 = vmul.f32 %v1672_v36, %v549_v61 }
 0x174   :  { %v1674_v44 = vpop.eup %1673  ;;  %v532_v45 = vadd.f32 %v1670_v18, %v531_v21 }
 0x175   :  { %v551_v53 = vadd.f32 %v1672_v36, %v550_v30  ;;  %v568_v14 = vmul.f32 %v1674_v44, %v566_v2  ;;  %v1676_v43 = vpop.eup %1675  ;;  %vm573_vm6 = vweird.f32 %v1674_v44 }
 0x176   :  { %v536_v1 = vsel %vm535_vm2, %v1670_v18, %v532_v45  ;;  %vm574_vm8 = vmor %vm572_vm7, %vm573_vm6 }
 0x177   :  { %v541_v33 = vsel %vm538_vm4, %v540_v46, %v536_v1  ;;  %v555_v27 = vsel %vm554_vm3, %v1672_v36, %v551_v53  ;;  %v569_v28 = vsub.f32 1.0, %v568_v14 }
 0x178   :  { %v560_v9 = vsel %vm557_vm5, %v559_v58, %v555_v27  ;;  %v586_v61 = vmul.f32 %v1676_v43, %v541_v33 }
 0x179   :  { %v585_v21 = vmul.f32 %v583_v54, %v560_v9  ;;  %v570_v15 = vmul.f32 %v1674_v44, %v569_v28 }
 0x17b   :  { %v2260_v29 = vadd.f32 %v586_v61, %v585_v21  ;;  %v571_v10 = vadd.f32 %v1674_v44, %v570_v15 }
 0x17d   :  { %1677 = vtanh.f32 %v2260_v29  ;;  %v575_v18 = vsel %vm574_vm8, %v1674_v44, %v571_v10 }
 0x17e   :  { %v580_v30 = vsel %vm577_vm9, %v579_v17, %v575_v18 }
 0x183   :  { %v1678_v36 = vpop.eup %1677 }
 0x184   :  { %v589_v16 = vmul.f32 %v1678_v36, %v580_v30 }
 0x186   :  { %v590_v45 = vpack.c.bf16 %v589_v16, %v589_v16  ;;  %v1404_v46 = vrot.slane %v589_v16, 2 }
 0x188   :  { %v592_v53 = vrot.slane %v590_v45, 1  ;;  %1422 = vst [vmem:[%s2461_s4 + $0x2] sm:$0x3] %v1404_v46 }
 0x18a   :  { %602 = vmatmul.bf16.vlgmr.msrb.gmra.mxu0 %v592_v53  ;;  %615 = vmatmul.bf16.vlgmr.msrb.gmra.mxu1 %v592_v53 }
 0x18b   :  { %628 = vmatmul.bf16.vlgmr.msrb.gmra.mxu2 %v592_v53  ;;  %641 = vmatmul.bf16.vlgmr.msrb.gmra.mxu3 %v592_v53 }
 0x18c   :  { %870 = vmatpush.bf16.msrb.mxu0 %v1859_v34  ;;  %883 = vmatpush.bf16.msrb.mxu1 %v1861_v35 }
 0x18d   :  { %896 = vmatpush.bf16.msrb.mxu2 %v1874_v40  ;;  %909 = vmatpush.bf16.msrb.mxu3 %v1872_v39 }
 0x190   :  { %871 = vmatpush.bf16.msrb.mxu0 %v1896_v47  ;;  %884 = vmatpush.bf16.msrb.mxu1 %v1898_v48 }
 0x191   :  { %897 = vmatpush.bf16.msrb.mxu2 %v1910_v52  ;;  %910 = vmatpush.bf16.msrb.mxu3 %v1908_v51 }
 0x194   :  { %872 = vmatpush.bf16.msrb.mxu0 %v1936_v59  ;;  %885 = vmatpush.bf16.msrb.mxu1 %v1938_v60 }
 0x195   :  { %898 = vmatpush.bf16.msrb.mxu2 %v1950_v0  ;;  %911 = vmatpush.bf16.msrb.mxu3 %v1948_v63 }
 0x198   :  { %873 = vmatpush.bf16.msrb.mxu0 %v1972_v7  ;;  %886 = vmatpush.bf16.msrb.mxu1 %v1974_v8 }
 0x199   :  { %899 = vmatpush.bf16.msrb.mxu2 %v1986_v12  ;;  %912 = vmatpush.bf16.msrb.mxu3 %v1984_v11 }
 0x19c   :  { %874 = vmatpush.bf16.msrb.mxu0 %v2008_v19  ;;  %887 = vmatpush.bf16.msrb.mxu1 %v2010_v20 }
 0x19d   :  { %900 = vmatpush.bf16.msrb.mxu2 %v2022_v24  ;;  %913 = vmatpush.bf16.msrb.mxu3 %v2020_v23 }
 0x1a0   :  { %875 = vmatpush.bf16.msrb.mxu0 %v2044_v31  ;;  %888 = vmatpush.bf16.msrb.mxu1 %v2046_v32 }
 0x1a1   :  { %901 = vmatpush.bf16.msrb.mxu2 %v2058_v38  ;;  %914 = vmatpush.bf16.msrb.mxu3 %v2056_v37 }
 0x1a4   :  { %876 = vmatpush.bf16.msrb.mxu0 %v2080_v49  ;;  %889 = vmatpush.bf16.msrb.mxu1 %v2082_v50 }
 0x1a5   :  { %902 = vmatpush.bf16.msrb.mxu2 %v2094_v56  ;;  %915 = vmatpush.bf16.msrb.mxu3 %v2092_v55 }
 0x1a8   :  { %877 = vmatpush.bf16.msrb.mxu0 %v2116_v3  ;;  %890 = vmatpush.bf16.msrb.mxu1 %v2118_v4 }
 0x1a9   :  { %903 = vmatpush.bf16.msrb.mxu2 %v2124_v6  ;;  %916 = vmatpush.bf16.msrb.mxu3 %v2122_v5 }
 0x207   :  { %v603_v2 = vpop.f32.mrf.mxu0  ;;  %v616_v44 = vpop.f32.mrf.mxu1 }
 0x208   :  { %v650_v14 = vrot.slane %v603_v2, 4  ;;  %v651_v54 = vrot.slane %v616_v44, 4 }
 0x20a   :  { %v658_v58 = vadd.f32 %v650_v14, %v2205_v41  ;;  %v659_v1 = vadd.f32 %v651_v54, %v2207_v42 }
 0x20c   :  { %v1591_v43 = vmul.f32 -1.442695, %v658_v58  ;;  %v1592_v33 = vmul.f32 -1.442695, %v659_v1 }
 0x20e   :  { %1679 = vpow2.f32 %v1591_v43  ;;  %v629_v27 = vpop.f32.mrf.mxu2  ;;  %v642_v28 = vpop.f32.mrf.mxu3 }
 0x20f   :  { %1681 = vpow2.f32 %v1592_v33  ;;  %v653_v9 = vrot.slane %v642_v28, 4  ;;  %v605_v61 = vpop.f32.mrf.mxu0  ;;  %v618_v21 = vpop.f32.mrf.mxu1  ;;  %v652_v16 = vrot.slane %v629_v27, 4 }
 0x211   :  { %v661_v15 = vadd.f32 %v653_v9, %v2211_v57  ;;  %v660_v2 = vadd.f32 %v652_v16, %v2214_v22 }
 0x213   :  { %v1593_v10 = vmul.f32 -1.442695, %v661_v15 }
 0x214   :  { %v1680_v62 = vpop.eup %1679 }
 0x215   :  { %v1682_v13 = vpop.eup %1681  ;;  %v665_v18 = vadd.f32 1.0, %v1680_v62  ;;  %1683 = vpow2.f32 %v1593_v10 }
 0x216   :  { %v684_v17 = vadd.f32 1.0, %v1682_v13  ;;  %v631_v36 = vpop.f32.mrf.mxu2  ;;  %v644_v30 = vpop.f32.mrf.mxu3 }
 0x217   :  { %1685 = vrcp.f32 %v665_v18  ;;  %v677_v43 = vand.u32 2147483648, %v665_v18  ;;  %v675_v9 = vand.u32 2147483647, %v665_v18  ;;  %vm671_vm12 = vweird.f32 %v665_v18 }
 0x218   :  { %1687 = vrcp.f32 %v684_v17  ;;  %v696_v33 = vand.u32 2147483648, %v684_v17  ;;  %v694_v27 = vand.u32 2147483647, %v684_v17  ;;  %vm690_vm13 = vweird.f32 %v684_v17 }
 0x219   :  { %v678_v10 = vor.u32 1.1754944e-38, %v677_v43  ;;  %v721_v36 = vrot.slane %v2260_v29, 6  ;;  %vm676_vm0 = vcmp.eq.f32.partialorder %v675_v9, 8.507059e+37 }
 0x21a   :  { %v697_v30 = vor.u32 1.1754944e-38, %v696_v33  ;;  %vm695_vm1 = vcmp.eq.f32.partialorder %v694_v27, 8.507059e+37 }
 0x21b   :  { %v1684_v45 = vpop.eup %1683 }
 0x21c   :  { %v704_v46 = vadd.f32 1.0, %v1684_v45 }
 0x21d   :  { %v1686_v53 = vpop.eup %1685 }
 0x21e   :  { %v1688_v44 = vpop.eup %1687  ;;  %v667_v14 = vmul.f32 %v1686_v53, %v665_v18  ;;  %1689 = vrcp.f32 %v704_v46  ;;  %vm672_vm10 = vweird.f32 %v1686_v53  ;;  %v716_v29 = vand.u32 2147483648, %v704_v46 }
 0x21f   :  { %v686_v54 = vmul.f32 %v1688_v44, %v684_v17  ;;  %1691 = vtanh.f32 %v660_v2  ;;  %vm691_vm11 = vweird.f32 %v1688_v44  ;;  %vm673_vm14 = vmor %vm671_vm12, %vm672_vm10  ;;  %vm710_vm3 = vweird.f32 %v704_v46 }
 0x220   :  { %v668_v58 = vsub.f32 1.0, %v667_v14  ;;  %vm692_vm15 = vmor %vm690_vm13, %vm691_vm11  ;;  %v714_v33 = vand.u32 2147483647, %v704_v46  ;;  %v717_v9 = vor.u32 1.1754944e-38, %v716_v29 }
 0x221   :  { %v687_v1 = vsub.f32 1.0, %v686_v54 }
 0x222   :  { %v669_v28 = vmul.f32 %v1686_v53, %v668_v58  ;;  %vm715_vm5 = vcmp.eq.f32.partialorder %v714_v33, 8.507059e+37 }
 0x223   :  { %v688_v61 = vmul.f32 %v1688_v44, %v687_v1 }
 0x224   :  { %v1690_v21 = vpop.eup %1689  ;;  %v670_v15 = vadd.f32 %v1686_v53, %v669_v28 }
 0x225   :  { %v689_v62 = vadd.f32 %v1688_v44, %v688_v61  ;;  %v706_v13 = vmul.f32 %v1690_v21, %v704_v46  ;;  %v1692_v45 = vpop.eup %1691  ;;  %vm711_vm2 = vweird.f32 %v1690_v21 }
 0x226   :  { %v674_v16 = vsel %vm673_vm14, %v1686_v53, %v670_v15  ;;  %vm712_vm4 = vmor %vm710_vm3, %vm711_vm2 }
 0x227   :  { %v679_v2 = vsel %vm676_vm0, %v678_v10, %v674_v16  ;;  %v693_v14 = vsel %vm692_vm15, %v1688_v44, %v689_v62  ;;  %v707_v54 = vsub.f32 1.0, %v706_v13 }
 0x228   :  { %v698_v58 = vsel %vm695_vm1, %v697_v30, %v693_v14  ;;  %v724_v1 = vmul.f32 %v1692_v45, %v679_v2 }
 0x229   :  { %v723_v28 = vmul.f32 %v721_v36, %v698_v58  ;;  %v708_v18 = vmul.f32 %v1690_v21, %v707_v54 }
 0x22b   :  { %v2303_v17 = vadd.f32 %v724_v1, %v723_v28  ;;  %v709_v43 = vadd.f32 %v1690_v21, %v708_v18 }
 0x22d   :  { %1693 = vtanh.f32 %v2303_v17  ;;  %v713_v53 = vsel %vm712_vm4, %v1690_v21, %v709_v43 }
 0x22e   :  { %v718_v61 = vsel %vm715_vm5, %v717_v9, %v713_v53 }
 0x233   :  { %v1694_v44 = vpop.eup %1693 }
 0x234   :  { %v727_v27 = vmul.f32 %v1694_v44, %v718_v61 }
 0x236   :  { %v728_v15 = vpack.c.bf16 %v727_v27, %v727_v27  ;;  %v1407_v10 = vrot.slane %v727_v27, 4 }
 0x238   :  { %v730_v62 = vrot.slane %v728_v15, 2  ;;  %1423 = vst [vmem:[%s2461_s4 + $0x4] sm:$0x3] %v1407_v10 }
 0x23a   :  { %740 = vmatmul.bf16.vlgmr.msra.gmra.mxu0 %v730_v62  ;;  %753 = vmatmul.bf16.vlgmr.msra.gmra.mxu1 %v730_v62 }
 0x23b   :  { %766 = vmatmul.bf16.vlgmr.msra.gmra.mxu2 %v730_v62  ;;  %779 = vmatmul.bf16.vlgmr.msra.gmra.mxu3 %v730_v62 }
 0x23c   :  { %993 = vmatpush.bf16.msra.mxu0 %v1859_v34  ;;  %1006 = vmatpush.bf16.msra.mxu1 %v1861_v35 }
 0x23d   :  { %1019 = vmatpush.bf16.msra.mxu2 %v1874_v40  ;;  %1032 = vmatpush.bf16.msra.mxu3 %v1872_v39 }
 0x240   :  { %994 = vmatpush.bf16.msra.mxu0 %v1896_v47  ;;  %1007 = vmatpush.bf16.msra.mxu1 %v1898_v48 }
 0x241   :  { %1020 = vmatpush.bf16.msra.mxu2 %v1910_v52  ;;  %1033 = vmatpush.bf16.msra.mxu3 %v1908_v51 }
 0x244   :  { %995 = vmatpush.bf16.msra.mxu0 %v1936_v59  ;;  %1008 = vmatpush.bf16.msra.mxu1 %v1938_v60 }
 0x245   :  { %1021 = vmatpush.bf16.msra.mxu2 %v1950_v0  ;;  %1034 = vmatpush.bf16.msra.mxu3 %v1948_v63 }
 0x248   :  { %996 = vmatpush.bf16.msra.mxu0 %v1972_v7  ;;  %1009 = vmatpush.bf16.msra.mxu1 %v1974_v8 }
 0x249   :  { %1022 = vmatpush.bf16.msra.mxu2 %v1986_v12  ;;  %1035 = vmatpush.bf16.msra.mxu3 %v1984_v11 }
 0x24c   :  { %997 = vmatpush.bf16.msra.mxu0 %v2008_v19  ;;  %1010 = vmatpush.bf16.msra.mxu1 %v2010_v20 }
 0x24d   :  { %1023 = vmatpush.bf16.msra.mxu2 %v2022_v24  ;;  %1036 = vmatpush.bf16.msra.mxu3 %v2020_v23 }
 0x250   :  { %998 = vmatpush.bf16.msra.mxu0 %v2044_v31  ;;  %1011 = vmatpush.bf16.msra.mxu1 %v2046_v32 }
 0x251   :  { %1024 = vmatpush.bf16.msra.mxu2 %v2058_v38  ;;  %1037 = vmatpush.bf16.msra.mxu3 %v2056_v37 }
 0x254   :  { %999 = vmatpush.bf16.msra.mxu0 %v2080_v49  ;;  %1012 = vmatpush.bf16.msra.mxu1 %v2082_v50 }
 0x255   :  { %1025 = vmatpush.bf16.msra.mxu2 %v2094_v56  ;;  %1038 = vmatpush.bf16.msra.mxu3 %v2092_v55 }
 0x258   :  { %1000 = vmatpush.bf16.msra.mxu0 %v2116_v3  ;;  %1013 = vmatpush.bf16.msra.mxu1 %v2118_v4 }
 0x259   :  { %1026 = vmatpush.bf16.msra.mxu2 %v2124_v6  ;;  %1039 = vmatpush.bf16.msra.mxu3 %v2122_v5 }
 0x2b7   :  { %v741_v46 = vpop.f32.mrf.mxu0  ;;  %v754_v21 = vpop.f32.mrf.mxu1 }
 0x2b8   :  { %v788_v13 = vrot.slane %v741_v46, 2  ;;  %v789_v36 = vrot.slane %v754_v21, 2 }
 0x2ba   :  { %v796_v30 = vadd.f32 %v788_v13, %v2205_v41  ;;  %v797_v16 = vadd.f32 %v789_v36, %v2207_v42 }
 0x2bc   :  { %v1594_v45 = vmul.f32 -1.442695, %v796_v30  ;;  %v1595_v2 = vmul.f32 -1.442695, %v797_v16 }
 0x2be   :  { %1695 = vpow2.f32 %v1594_v45  ;;  %v767_v14 = vpop.f32.mrf.mxu2  ;;  %v780_v54 = vpop.f32.mrf.mxu3 }
 0x2bf   :  { %1697 = vpow2.f32 %v1595_v2  ;;  %v791_v58 = vrot.slane %v780_v54, 2  ;;  %v743_v1 = vpop.f32.mrf.mxu0  ;;  %v756_v28 = vpop.f32.mrf.mxu1  ;;  %v790_v42 = vrot.slane %v767_v14, 2 }
 0x2c1   :  { %v799_v18 = vadd.f32 %v791_v58, %v2211_v57  ;;  %v798_v10 = vadd.f32 %v790_v42, %v2214_v22 }
 0x2c3   :  { %v1596_v43 = vmul.f32 -1.442695, %v799_v18  ;;  %v859_v18 = vrot.slane %v2303_v17, 6 }
 0x2c4   :  { %v1696_v29 = vpop.eup %1695 }
 0x2c5   :  { %v1698_v33 = vpop.eup %1697  ;;  %v803_v53 = vadd.f32 1.0, %v1696_v29  ;;  %1699 = vpow2.f32 %v1596_v43 }
 0x2c6   :  { %v822_v9 = vadd.f32 1.0, %v1698_v33  ;;  %v769_v41 = vpop.f32.mrf.mxu2  ;;  %v782_v44 = vpop.f32.mrf.mxu3 }
 0x2c7   :  { %1701 = vrcp.f32 %v803_v53  ;;  %v815_v36 = vand.u32 2147483648, %v803_v53  ;;  %v813_v45 = vand.u32 2147483647, %v803_v53  ;;  %vm809_vm8 = vweird.f32 %v803_v53 }
 0x2c8   :  { %1703 = vrcp.f32 %v822_v9  ;;  %v834_v30 = vand.u32 2147483648, %v822_v9  ;;  %v832_v14 = vand.u32 2147483647, %v822_v9  ;;  %vm828_vm9 = vweird.f32 %v822_v9 }
 0x2c9   :  { %v816_v22 = vor.u32 1.1754944e-38, %v815_v36  ;;  %vm814_vm12 = vcmp.eq.f32.partialorder %v813_v45, 8.507059e+37 }
 0x2ca   :  { %v835_v43 = vor.u32 1.1754944e-38, %v834_v30  ;;  %vm833_vm13 = vcmp.eq.f32.partialorder %v832_v14, 8.507059e+37 }
 0x2cb   :  { %v1700_v61 = vpop.eup %1699 }
 0x2cc   :  { %v842_v27 = vadd.f32 1.0, %v1700_v61 }
 0x2cd   :  { %v1702_v15 = vpop.eup %1701 }
 0x2ce   :  { %v1704_v62 = vpop.eup %1703  ;;  %v805_v46 = vmul.f32 %v1702_v15, %v803_v53  ;;  %1705 = vrcp.f32 %v842_v27  ;;  %vm810_vm6 = vweird.f32 %v1702_v15  ;;  %v854_v17 = vand.u32 2147483648, %v842_v27 }
 0x2cf   :  { %v824_v57 = vmul.f32 %v1704_v62, %v822_v9  ;;  %1707 = vtanh.f32 %v798_v10  ;;  %vm829_vm7 = vweird.f32 %v1704_v62  ;;  %vm811_vm10 = vmor %vm809_vm8, %vm810_vm6  ;;  %vm848_vm15 = vweird.f32 %v842_v27 }
 0x2d0   :  { %v806_v21 = vsub.f32 1.0, %v805_v46  ;;  %vm830_vm11 = vmor %vm828_vm9, %vm829_vm7 }
 0x2d1   :  { %v825_v13 = vsub.f32 1.0, %v824_v57 }
 0x2d2   :  { %v807_v16 = vmul.f32 %v1702_v15, %v806_v21  ;;  %v852_v21 = vand.u32 2147483647, %v842_v27 }
 0x2d3   :  { %v826_v2 = vmul.f32 %v1704_v62, %v825_v13  ;;  %v855_v13 = vor.u32 1.1754944e-38, %v854_v17 }
 0x2d4   :  { %v1706_v54 = vpop.eup %1705  ;;  %v808_v58 = vadd.f32 %v1702_v15, %v807_v16  ;;  %vm853_vm1 = vcmp.eq.f32.partialorder %v852_v21, 8.507059e+37 }
 0x2d5   :  { %v827_v1 = vadd.f32 %v1704_v62, %v826_v2  ;;  %v844_v28 = vmul.f32 %v1706_v54, %v842_v27  ;;  %v1708_v33 = vpop.eup %1707  ;;  %vm849_vm14 = vweird.f32 %v1706_v54 }
 0x2d6   :  { %v812_v29 = vsel %vm811_vm10, %v1702_v15, %v808_v58  ;;  %vm850_vm0 = vmor %vm848_vm15, %vm849_vm14 }
 0x2d7   :  { %v817_v41 = vsel %vm814_vm12, %v816_v22, %v812_v29  ;;  %v831_v44 = vsel %vm830_vm11, %v1704_v62, %v827_v1  ;;  %v845_v42 = vsub.f32 1.0, %v844_v28 }
 0x2d8   :  { %v836_v61 = vsel %vm833_vm13, %v835_v43, %v831_v44  ;;  %v862_v10 = vmul.f32 %v1708_v33, %v817_v41  ;;  %v2466_v43 = vld [vmem:[#allocation2_spill] sm:$0xff] }
 0x2d9   :  { %v861_v46 = vmul.f32 %v859_v18, %v836_v61  ;;  %v846_v53 = vmul.f32 %v1706_v54, %v845_v42 }
 0x2db   :  { %v2346_v9 = vadd.f32 %v862_v10, %v861_v46  ;;  %v847_v57 = vadd.f32 %v1706_v54, %v846_v53 }
 0x2dd   :  { %1709 = vtanh.f32 %v2346_v9  ;;  %v851_v15 = vsel %vm850_vm0, %v1706_v54, %v847_v57 }
 0x2de   :  { %v856_v36 = vsel %vm853_vm1, %v855_v13, %v851_v15  ;;  %v2467_v13 = vld [vmem:[#allocation3_spill] sm:$0xff] }
 0x2e3   :  { %v1710_v62 = vpop.eup %1709 }
 0x2e4   :  { %v865_v30 = vmul.f32 %v1710_v62, %v856_v36 }
 0x2e6   :  { %v866_v16 = vpack.c.bf16 %v865_v30, %v865_v30  ;;  %v1410_v45 = vrot.slane %v865_v30, 6 }
 0x2e8   :  { %v868_v2 = vrot.slane %v866_v16, 3  ;;  %1424 = vst [vmem:[%s2461_s4 + $0x6] sm:$0x3] %v1410_v45 }
 0x2ea   :  { %878 = vmatmul.bf16.vlgmr.msrb.gmra.mxu0 %v868_v2  ;;  %891 = vmatmul.bf16.vlgmr.msrb.gmra.mxu1 %v868_v2 }
 0x2eb   :  { %904 = vmatmul.bf16.vlgmr.msrb.gmra.mxu2 %v868_v2  ;;  %917 = vmatmul.bf16.vlgmr.msrb.gmra.mxu3 %v868_v2 }
 0x2ec   :  { %1131 = vmatpush.bf16.msrb.mxu0 %v1859_v34  ;;  %1144 = vmatpush.bf16.msrb.mxu1 %v1861_v35 }
 0x2ed   :  { %1157 = vmatpush.bf16.msrb.mxu2 %v1874_v40  ;;  %1170 = vmatpush.bf16.msrb.mxu3 %v1872_v39 }
 0x2f0   :  { %1132 = vmatpush.bf16.msrb.mxu0 %v1896_v47  ;;  %1145 = vmatpush.bf16.msrb.mxu1 %v1898_v48 }
 0x2f1   :  { %1158 = vmatpush.bf16.msrb.mxu2 %v1910_v52  ;;  %1171 = vmatpush.bf16.msrb.mxu3 %v1908_v51 }
 0x2f4   :  { %1133 = vmatpush.bf16.msrb.mxu0 %v1936_v59  ;;  %1146 = vmatpush.bf16.msrb.mxu1 %v1938_v60 }
 0x2f5   :  { %1159 = vmatpush.bf16.msrb.mxu2 %v1950_v0  ;;  %1172 = vmatpush.bf16.msrb.mxu3 %v1948_v63 }
 0x2f8   :  { %1134 = vmatpush.bf16.msrb.mxu0 %v1972_v7  ;;  %1147 = vmatpush.bf16.msrb.mxu1 %v1974_v8 }
 0x2f9   :  { %1160 = vmatpush.bf16.msrb.mxu2 %v1986_v12  ;;  %1173 = vmatpush.bf16.msrb.mxu3 %v1984_v11 }
 0x2fc   :  { %1135 = vmatpush.bf16.msrb.mxu0 %v2008_v19  ;;  %1148 = vmatpush.bf16.msrb.mxu1 %v2010_v20 }
 0x2fd   :  { %1161 = vmatpush.bf16.msrb.mxu2 %v2022_v24  ;;  %1174 = vmatpush.bf16.msrb.mxu3 %v2020_v23 }
 0x300   :  { %1136 = vmatpush.bf16.msrb.mxu0 %v2044_v31  ;;  %1149 = vmatpush.bf16.msrb.mxu1 %v2046_v32 }
 0x301   :  { %1162 = vmatpush.bf16.msrb.mxu2 %v2058_v38  ;;  %1175 = vmatpush.bf16.msrb.mxu3 %v2056_v37 }
 0x304   :  { %1137 = vmatpush.bf16.msrb.mxu0 %v2080_v49  ;;  %1150 = vmatpush.bf16.msrb.mxu1 %v2082_v50 }
 0x305   :  { %1163 = vmatpush.bf16.msrb.mxu2 %v2094_v56  ;;  %1176 = vmatpush.bf16.msrb.mxu3 %v2092_v55 }
 0x308   :  { %1138 = vmatpush.bf16.msrb.mxu0 %v2116_v3  ;;  %1151 = vmatpush.bf16.msrb.mxu1 %v2118_v4 }
 0x309   :  { %1164 = vmatpush.bf16.msrb.mxu2 %v2124_v6  ;;  %1177 = vmatpush.bf16.msrb.mxu3 %v2122_v5 }
 0x367   :  { %v879_v27 = vpop.f32.mrf.mxu0  ;;  %v892_v14 = vpop.f32.mrf.mxu1 }
 0x368   :  { %v922_v54 = vadd.f32 %v879_v27, %v2197_v25  ;;  %v923_v58 = vadd.f32 %v892_v14, %v2199_v26 }
 0x36a   :  { %v1597_v22 = vmul.f32 -1.442695, %v922_v54  ;;  %v1598_v1 = vmul.f32 -1.442695, %v923_v58 }
 0x36c   :  { %1711 = vpow2.f32 %v1597_v22 }
 0x36d   :  { %1713 = vpow2.f32 %v1598_v1 }
 0x36e   :  { %v905_v28 = vpop.f32.mrf.mxu2  ;;  %v918_v18 = vpop.f32.mrf.mxu3 }
 0x36f   :  { %v925_v29 = vadd.f32 %v918_v18, %v2466_v43  ;;  %v881_v33 = vpop.f32.mrf.mxu0  ;;  %v894_v41 = vpop.f32.mrf.mxu1  ;;  %v924_v62 = vadd.f32 %v905_v28, %v2467_v13 }
 0x371   :  { %v1599_v44 = vmul.f32 -1.442695, %v925_v29 }
 0x372   :  { %v1712_v42 = vpop.eup %1711 }
 0x373   :  { %v1714_v61 = vpop.eup %1713  ;;  %v929_v10 = vadd.f32 1.0, %v1712_v42  ;;  %1715 = vpow2.f32 %v1599_v44 }
 0x374   :  { %v948_v46 = vadd.f32 1.0, %v1714_v61  ;;  %v985_v61 = vrot.slane %v2346_v9, 6 }
 0x375   :  { %1717 = vrcp.f32 %v929_v10  ;;  %v941_v27 = vand.u32 2147483648, %v929_v10  ;;  %v939_v58 = vand.u32 2147483647, %v929_v10  ;;  %vm935_vm4 = vweird.f32 %v929_v10 }
 0x376   :  { %1719 = vrcp.f32 %v948_v46  ;;  %v907_v53 = vpop.f32.mrf.mxu2  ;;  %v920_v57 = vpop.f32.mrf.mxu3  ;;  %v960_v14 = vand.u32 2147483648, %v948_v46  ;;  %v958_v1 = vand.u32 2147483647, %v948_v46  ;;  %vm954_vm5 = vweird.f32 %v948_v46 }
 0x377   :  { %v942_v28 = vor.u32 1.1754944e-38, %v941_v27  ;;  %vm940_vm8 = vcmp.eq.f32.partialorder %v939_v58, 8.507059e+37 }
 0x378   :  { %v961_v44 = vor.u32 1.1754944e-38, %v960_v14  ;;  %vm959_vm9 = vcmp.eq.f32.partialorder %v958_v1, 8.507059e+37 }
 0x379   :  { %v1716_v17 = vpop.eup %1715 }
 0x37a   :  { %v968_v21 = vadd.f32 1.0, %v1716_v17 }
 0x37b   :  { %v1718_v15 = vpop.eup %1717 }
 0x37c   :  { %v1720_v36 = vpop.eup %1719  ;;  %v931_v30 = vmul.f32 %v1718_v15, %v929_v10  ;;  %1721 = vrcp.f32 %v968_v21  ;;  %vm936_vm2 = vweird.f32 %v1718_v15  ;;  %v980_v27 = vand.u32 2147483648, %v968_v21 }
 0x37d   :  { %v950_v16 = vmul.f32 %v1720_v36, %v948_v46  ;;  %1723 = vtanh.f32 %v924_v62  ;;  %vm955_vm3 = vweird.f32 %v1720_v36  ;;  %vm937_vm6 = vmor %vm935_vm4, %vm936_vm2  ;;  %vm974_vm11 = vweird.f32 %v968_v21 }
 0x37e   :  { %v932_v45 = vsub.f32 1.0, %v931_v30  ;;  %vm956_vm7 = vmor %vm954_vm5, %vm955_vm3  ;;  %v981_v14 = vor.u32 1.1754944e-38, %v980_v27 }
 0x37f   :  { %v951_v2 = vsub.f32 1.0, %v950_v16 }
 0x380   :  { %v933_v54 = vmul.f32 %v1718_v15, %v932_v45 }
 0x381   :  { %v952_v22 = vmul.f32 %v1720_v36, %v951_v2 }
 0x382   :  { %v1722_v18 = vpop.eup %1721  ;;  %v934_v29 = vadd.f32 %v1718_v15, %v933_v54 }
 0x383   :  { %v953_v33 = vadd.f32 %v1720_v36, %v952_v22  ;;  %v970_v41 = vmul.f32 %v1722_v18, %v968_v21  ;;  %v1724_v53 = vpop.eup %1723  ;;  %vm975_vm10 = vweird.f32 %v1722_v18 }
 0x384   :  { %v938_v42 = vsel %vm937_vm6, %v1718_v15, %v934_v29  ;;  %v978_v15 = vand.u32 2147483647, %v968_v21  ;;  %vm976_vm12 = vmor %vm974_vm11, %vm975_vm10 }
 0x385   :  { %v943_v57 = vsel %vm940_vm8, %v942_v28, %v938_v42  ;;  %v957_v17 = vsel %vm956_vm7, %v1720_v36, %v953_v33  ;;  %v971_v62 = vsub.f32 1.0, %v970_v41 }
 0x386   :  { %v962_v30 = vsel %vm959_vm9, %v961_v44, %v957_v17  ;;  %v988_v16 = vmul.f32 %v1724_v53, %v943_v57  ;;  %vm979_vm13 = vcmp.eq.f32.partialorder %v978_v15, 8.507059e+37 }
 0x387   :  { %v987_v45 = vmul.f32 %v985_v61, %v962_v30  ;;  %v972_v10 = vmul.f32 %v1722_v18, %v971_v62 }
 0x389   :  { %v2389_v46 = vadd.f32 %v988_v16, %v987_v45  ;;  %v973_v2 = vadd.f32 %v1722_v18, %v972_v10 }
 0x38b   :  { %1725 = vtanh.f32 %v2389_v46  ;;  %v977_v9 = vsel %vm976_vm12, %v1722_v18, %v973_v2  ;;  %v1120_v53 = vrot.slane %v2389_v46, 6 }
 0x38c   :  { %v982_v54 = vsel %vm979_vm13, %v981_v14, %v977_v9 }
 0x391   :  { %v1726_v36 = vpop.eup %1725 }
 0x392   :  { %v991_v58 = vmul.f32 %v1726_v36, %v982_v54 }
 0x394   :  { %v992_v22 = vpack.c.bf16 %v991_v58, %v991_v58  ;;  %1425 = vst [vmem:[%s2461_s4 + $0x8] sm:$0x3] %v991_v58 }
 0x396   :  { %1001 = vmatmul.bf16.vlgmr.msra.gmra.mxu0 %v992_v22  ;;  %1014 = vmatmul.bf16.vlgmr.msra.gmra.mxu1 %v992_v22 }
 0x397   :  { %1027 = vmatmul.bf16.vlgmr.msra.gmra.mxu2 %v992_v22  ;;  %1040 = vmatmul.bf16.vlgmr.msra.gmra.mxu3 %v992_v22 }
 0x398   :  { %1269 = vmatpush.bf16.msra.mxu0 %v1859_v34  ;;  %1282 = vmatpush.bf16.msra.mxu1 %v1861_v35 }
 0x399   :  { %1295 = vmatpush.bf16.msra.mxu2 %v1874_v40  ;;  %1308 = vmatpush.bf16.msra.mxu3 %v1872_v39 }
 0x39c   :  { %1270 = vmatpush.bf16.msra.mxu0 %v1896_v47  ;;  %1283 = vmatpush.bf16.msra.mxu1 %v1898_v48 }
 0x39d   :  { %1296 = vmatpush.bf16.msra.mxu2 %v1910_v52  ;;  %1309 = vmatpush.bf16.msra.mxu3 %v1908_v51 }
 0x3a0   :  { %1271 = vmatpush.bf16.msra.mxu0 %v1936_v59  ;;  %1284 = vmatpush.bf16.msra.mxu1 %v1938_v60 }
 0x3a1   :  { %1297 = vmatpush.bf16.msra.mxu2 %v1950_v0  ;;  %1310 = vmatpush.bf16.msra.mxu3 %v1948_v63 }
 0x3a4   :  { %1272 = vmatpush.bf16.msra.mxu0 %v1972_v7  ;;  %1285 = vmatpush.bf16.msra.mxu1 %v1974_v8 }
 0x3a5   :  { %1298 = vmatpush.bf16.msra.mxu2 %v1986_v12  ;;  %1311 = vmatpush.bf16.msra.mxu3 %v1984_v11 }
 0x3a8   :  { %1273 = vmatpush.bf16.msra.mxu0 %v2008_v19  ;;  %1286 = vmatpush.bf16.msra.mxu1 %v2010_v20 }
 0x3a9   :  { %1299 = vmatpush.bf16.msra.mxu2 %v2022_v24  ;;  %1312 = vmatpush.bf16.msra.mxu3 %v2020_v23 }
 0x3ac   :  { %1274 = vmatpush.bf16.msra.mxu0 %v2044_v31  ;;  %1287 = vmatpush.bf16.msra.mxu1 %v2046_v32 }
 0x3ad   :  { %1300 = vmatpush.bf16.msra.mxu2 %v2058_v38  ;;  %1313 = vmatpush.bf16.msra.mxu3 %v2056_v37 }
 0x3b0   :  { %1275 = vmatpush.bf16.msra.mxu0 %v2080_v49  ;;  %1288 = vmatpush.bf16.msra.mxu1 %v2082_v50 }
 0x3b1   :  { %1301 = vmatpush.bf16.msra.mxu2 %v2094_v56  ;;  %1314 = vmatpush.bf16.msra.mxu3 %v2092_v55 }
 0x3b4   :  { %1276 = vmatpush.bf16.msra.mxu0 %v2116_v3  ;;  %1289 = vmatpush.bf16.msra.mxu1 %v2118_v4 }
 0x3b5   :  { %1302 = vmatpush.bf16.msra.mxu2 %v2124_v6  ;;  %1315 = vmatpush.bf16.msra.mxu3 %v2122_v5 }
 0x413   :  { %v1002_v34 = vpop.f32.mrf.mxu0  ;;  %v1015_v35 = vpop.f32.mrf.mxu1 }
 0x414   :  { %v1049_v39 = vrot.slane %v1002_v34, 6  ;;  %v1050_v40 = vrot.slane %v1015_v35, 6 }
 0x416   :  { %v1057_v47 = vadd.f32 %v1049_v39, %v2197_v25  ;;  %v1058_v48 = vadd.f32 %v1050_v40, %v2199_v26 }
 0x418   :  { %v1600_v51 = vmul.f32 -1.442695, %v1057_v47  ;;  %v1601_v52 = vmul.f32 -1.442695, %v1058_v48 }
 0x41a   :  { %1727 = vpow2.f32 %v1600_v51  ;;  %v1028_v59 = vpop.f32.mrf.mxu2  ;;  %v1041_v60 = vpop.f32.mrf.mxu3 }
 0x41b   :  { %1729 = vpow2.f32 %v1601_v52  ;;  %v1052_v63 = vrot.slane %v1041_v60, 6  ;;  %v1004_v0 = vpop.f32.mrf.mxu0  ;;  %v1017_v7 = vpop.f32.mrf.mxu1  ;;  %v1051_v32 = vrot.slane %v1028_v59, 6 }
 0x41d   :  { %v1060_v8 = vadd.f32 %v1052_v63, %v2466_v43  ;;  %v1059_v50 = vadd.f32 %v1051_v32, %v2467_v13 }
 0x41f   :  { %v1602_v11 = vmul.f32 -1.442695, %v1060_v8 }
 0x420   :  { %v1728_v12 = vpop.eup %1727 }
 0x421   :  { %v1730_v19 = vpop.eup %1729  ;;  %v1064_v20 = vadd.f32 1.0, %v1728_v12  ;;  %1731 = vpow2.f32 %v1602_v11 }
 0x422   :  { %v1083_v23 = vadd.f32 1.0, %v1730_v19  ;;  %v1030_v24 = vpop.f32.mrf.mxu2  ;;  %v1043_v31 = vpop.f32.mrf.mxu3 }
 0x423   :  { %1733 = vrcp.f32 %v1064_v20  ;;  %v1076_v6 = vand.u32 2147483648, %v1064_v20  ;;  %v1074_v18 = vand.u32 2147483647, %v1064_v20  ;;  %vm1070_vm0 = vweird.f32 %v1064_v20 }
 0x424   :  { %1735 = vrcp.f32 %v1083_v23  ;;  %v1095_v21 = vand.u32 2147483648, %v1083_v23  ;;  %v1093_v28 = vand.u32 2147483647, %v1083_v23  ;;  %vm1089_vm1 = vweird.f32 %v1083_v23 }
 0x425   :  { %v1077_v44 = vor.u32 1.1754944e-38, %v1076_v6  ;;  %vm1075_vm4 = vcmp.eq.f32.partialorder %v1074_v18, 8.507059e+37 }
 0x426   :  { %v1096_v57 = vor.u32 1.1754944e-38, %v1095_v21  ;;  %vm1094_vm5 = vcmp.eq.f32.partialorder %v1093_v28, 8.507059e+37 }
 0x427   :  { %v1732_v37 = vpop.eup %1731 }
 0x428   :  { %v1103_v38 = vadd.f32 1.0, %v1732_v37 }
 0x429   :  { %v1734_v49 = vpop.eup %1733 }
 0x42a   :  { %v1736_v55 = vpop.eup %1735  ;;  %v1066_v56 = vmul.f32 %v1734_v49, %v1064_v20  ;;  %1737 = vrcp.f32 %v1103_v38  ;;  %vm1071_vm14 = vweird.f32 %v1734_v49  ;;  %v1115_v46 = vand.u32 2147483648, %v1103_v38 }
 0x42b   :  { %v1085_v3 = vmul.f32 %v1736_v55, %v1083_v23  ;;  %1739 = vtanh.f32 %v1059_v50  ;;  %vm1090_vm15 = vweird.f32 %v1736_v55  ;;  %vm1072_vm2 = vmor %vm1070_vm0, %vm1071_vm14  ;;  %vm1109_vm7 = vweird.f32 %v1103_v38 }
 0x42c   :  { %v1067_v4 = vsub.f32 1.0, %v1066_v56  ;;  %vm1091_vm3 = vmor %vm1089_vm1, %vm1090_vm15  ;;  %v1113_v36 = vand.u32 2147483647, %v1103_v38  ;;  %v1116_v58 = vor.u32 1.1754944e-38, %v1115_v46 }
 0x42d   :  { %v1086_v5 = vsub.f32 1.0, %v1085_v3 }
 0x42e   :  { %v1068_v1 = vmul.f32 %v1734_v49, %v1067_v4  ;;  %vm1114_vm9 = vcmp.eq.f32.partialorder %v1113_v36, 8.507059e+37 }
 0x42f   :  { %v1087_v29 = vmul.f32 %v1736_v55, %v1086_v5 }
 0x430   :  { %v1738_v33 = vpop.eup %1737  ;;  %v1069_v41 = vadd.f32 %v1734_v49, %v1068_v1 }
 0x431   :  { %v1088_v42 = vadd.f32 %v1736_v55, %v1087_v29  ;;  %v1105_v61 = vmul.f32 %v1738_v33, %v1103_v38  ;;  %v1740_v62 = vpop.eup %1739  ;;  %vm1110_vm6 = vweird.f32 %v1738_v33 }
 0x432   :  { %v1073_v17 = vsel %vm1072_vm2, %v1734_v49, %v1069_v41  ;;  %vm1111_vm8 = vmor %vm1109_vm7, %vm1110_vm6 }
 0x433   :  { %v1078_v30 = vsel %vm1075_vm4, %v1077_v44, %v1073_v17  ;;  %v1092_v16 = vsel %vm1091_vm3, %v1736_v55, %v1088_v42  ;;  %v1106_v45 = vsub.f32 1.0, %v1105_v61 }
 0x434   :  { %v1097_v10 = vsel %vm1094_vm5, %v1096_v57, %v1092_v16  ;;  %v1123_v2 = vmul.f32 %v1740_v62, %v1078_v30 }
 0x435   :  { %v1122_v27 = vmul.f32 %v1120_v53, %v1097_v10  ;;  %v1107_v15 = vmul.f32 %v1738_v33, %v1106_v45 }
 0x437   :  { %v2432_v9 = vadd.f32 %v1123_v2, %v1122_v27  ;;  %v1108_v14 = vadd.f32 %v1738_v33, %v1107_v15 }
 0x439   :  { %1741 = vtanh.f32 %v2432_v9  ;;  %v1112_v54 = vsel %vm1111_vm8, %v1738_v33, %v1108_v14  ;;  %v1258_v16 = vrot.slane %v2432_v9, 6 }
 0x43a   :  { %v1117_v34 = vsel %vm1114_vm9, %v1116_v58, %v1112_v54 }
 0x43f   :  { %v1742_v22 = vpop.eup %1741 }
 0x440   :  { %v1126_v35 = vmul.f32 %v1742_v22, %v1117_v34 }
 0x442   :  { %v1127_v39 = vpack.c.bf16 %v1126_v35, %v1126_v35  ;;  %v1413_v40 = vrot.slane %v1126_v35, 2 }
 0x444   :  { %v1129_v47 = vrot.slane %v1127_v39, 1  ;;  %1426 = vst [vmem:[%s2461_s4 + $0xa] sm:$0x3] %v1413_v40 }
 0x446   :  { %1139 = vmatmul.bf16.vlgmr.msrb.gmra.mxu0 %v1129_v47  ;;  %1152 = vmatmul.bf16.vlgmr.msrb.gmra.mxu1 %v1129_v47 }
 0x447   :  { %1165 = vmatmul.bf16.vlgmr.msrb.gmra.mxu2 %v1129_v47  ;;  %1178 = vmatmul.bf16.vlgmr.msrb.gmra.mxu3 %v1129_v47 }
 0x4c3   :  { %v1140_v48 = vpop.f32.mrf.mxu0  ;;  %v1153_v51 = vpop.f32.mrf.mxu1 }
 0x4c4   :  { %v1187_v52 = vrot.slane %v1140_v48, 4  ;;  %v1188_v59 = vrot.slane %v1153_v51, 4 }
 0x4c6   :  { %v1195_v60 = vadd.f32 %v1187_v52, %v2197_v25  ;;  %v1196_v63 = vadd.f32 %v1188_v59, %v2199_v26 }
 0x4c8   :  { %v1603_v0 = vmul.f32 -1.442695, %v1195_v60  ;;  %v1604_v7 = vmul.f32 -1.442695, %v1196_v63 }
 0x4ca   :  { %1743 = vpow2.f32 %v1603_v0  ;;  %v1166_v8 = vpop.f32.mrf.mxu2  ;;  %v1179_v11 = vpop.f32.mrf.mxu3 }
 0x4cb   :  { %1745 = vpow2.f32 %v1604_v7  ;;  %v1190_v12 = vrot.slane %v1179_v11, 4  ;;  %v1142_v19 = vpop.f32.mrf.mxu0  ;;  %v1155_v20 = vpop.f32.mrf.mxu1  ;;  %v1189_v55 = vrot.slane %v1166_v8, 4 }
 0x4cd   :  { %v1198_v23 = vadd.f32 %v1190_v12, %v2466_v43  ;;  %v1197_v5 = vadd.f32 %v1189_v55, %v2467_v13 }
 0x4cf   :  { %v1605_v24 = vmul.f32 -1.442695, %v1198_v23 }
 0x4d0   :  { %v1744_v31 = vpop.eup %1743 }
 0x4d1   :  { %v1746_v32 = vpop.eup %1745  ;;  %v1202_v37 = vadd.f32 1.0, %v1744_v31  ;;  %1747 = vpow2.f32 %v1605_v24 }
 0x4d2   :  { %v1221_v38 = vadd.f32 1.0, %v1746_v32  ;;  %v1168_v49 = vpop.f32.mrf.mxu2  ;;  %v1181_v50 = vpop.f32.mrf.mxu3 }
 0x4d3   :  { %1749 = vrcp.f32 %v1202_v37  ;;  %v1214_v28 = vand.u32 2147483648, %v1202_v37  ;;  %v1212_v44 = vand.u32 2147483647, %v1202_v37  ;;  %vm1208_vm12 = vweird.f32 %v1202_v37 }
 0x4d4   :  { %1751 = vrcp.f32 %v1221_v38  ;;  %v1233_v33 = vand.u32 2147483648, %v1221_v38  ;;  %v1231_v61 = vand.u32 2147483647, %v1221_v38  ;;  %vm1227_vm13 = vweird.f32 %v1221_v38 }
 0x4d5   :  { %v1215_v17 = vor.u32 1.1754944e-38, %v1214_v28  ;;  %vm1213_vm0 = vcmp.eq.f32.partialorder %v1212_v44, 8.507059e+37 }
 0x4d6   :  { %v1234_v45 = vor.u32 1.1754944e-38, %v1233_v33  ;;  %vm1232_vm1 = vcmp.eq.f32.partialorder %v1231_v61, 8.507059e+37 }
 0x4d7   :  { %v1748_v56 = vpop.eup %1747 }
 0x4d8   :  { %v1241_v3 = vadd.f32 1.0, %v1748_v56 }
 0x4d9   :  { %v1750_v4 = vpop.eup %1749 }
 0x4da   :  { %v1752_v6 = vpop.eup %1751  ;;  %v1204_v21 = vmul.f32 %v1750_v4, %v1202_v37  ;;  %1753 = vrcp.f32 %v1241_v3  ;;  %vm1209_vm10 = vweird.f32 %v1750_v4  ;;  %v1253_v9 = vand.u32 2147483648, %v1241_v3 }
 0x4db   :  { %v1223_v1 = vmul.f32 %v1752_v6, %v1221_v38  ;;  %1755 = vtanh.f32 %v1197_v5  ;;  %vm1228_vm11 = vweird.f32 %v1752_v6  ;;  %vm1210_vm14 = vmor %vm1208_vm12, %vm1209_vm10  ;;  %vm1247_vm3 = vweird.f32 %v1241_v3 }
 0x4dc   :  { %v1205_v18 = vsub.f32 1.0, %v1204_v21  ;;  %vm1229_vm15 = vmor %vm1227_vm13, %vm1228_vm11  ;;  %v1251_v35 = vand.u32 2147483647, %v1241_v3  ;;  %v1254_v40 = vor.u32 1.1754944e-38, %v1253_v9 }
 0x4dd   :  { %v1224_v29 = vsub.f32 1.0, %v1223_v1 }
 0x4de   :  { %v1206_v41 = vmul.f32 %v1750_v4, %v1205_v18  ;;  %vm1252_vm5 = vcmp.eq.f32.partialorder %v1251_v35, 8.507059e+37 }
 0x4df   :  { %v1225_v42 = vmul.f32 %v1752_v6, %v1224_v29 }
 0x4e0   :  { %v1754_v53 = vpop.eup %1753  ;;  %v1207_v57 = vadd.f32 %v1750_v4, %v1206_v41 }
 0x4e1   :  { %v1226_v62 = vadd.f32 %v1752_v6, %v1225_v42  ;;  %v1243_v30 = vmul.f32 %v1754_v53, %v1241_v3  ;;  %v1756_v2 = vpop.eup %1755  ;;  %vm1248_vm2 = vweird.f32 %v1754_v53 }
 0x4e2   :  { %v1211_v10 = vsel %vm1210_vm14, %v1750_v4, %v1207_v57  ;;  %vm1249_vm4 = vmor %vm1247_vm3, %vm1248_vm2 }
 0x4e3   :  { %v1216_v27 = vsel %vm1213_vm0, %v1215_v17, %v1211_v10  ;;  %v1230_v15 = vsel %vm1229_vm15, %v1752_v6, %v1226_v62  ;;  %v1244_v14 = vsub.f32 1.0, %v1243_v30 }
 0x4e4   :  { %v1235_v46 = vsel %vm1232_vm1, %v1234_v45, %v1230_v15  ;;  %v1261_v36 = vmul.f32 %v1756_v2, %v1216_v27 }
 0x4e5   :  { %v1260_v54 = vmul.f32 %v1258_v16, %v1235_v46  ;;  %v1245_v58 = vmul.f32 %v1754_v53, %v1244_v14 }
 0x4e7   :  { %v2443_v22 = vadd.f32 %v1261_v36, %v1260_v54  ;;  %v1246_v34 = vadd.f32 %v1754_v53, %v1245_v58 }
 0x4e9   :  { %1757 = vtanh.f32 %v2443_v22  ;;  %v1250_v39 = vsel %vm1249_vm4, %v1754_v53, %v1246_v34  ;;  %v1396_v45 = vrot.slane %v2443_v22, 6 }
 0x4ea   :  { %v1255_v48 = vsel %vm1252_vm5, %v1254_v40, %v1250_v39 }
 0x4ef   :  { %v1758_v47 = vpop.eup %1757 }
 0x4f0   :  { %v1264_v51 = vmul.f32 %v1758_v47, %v1255_v48 }
 0x4f2   :  { %v1265_v52 = vpack.c.bf16 %v1264_v51, %v1264_v51  ;;  %v1416_v59 = vrot.slane %v1264_v51, 4 }
 0x4f4   :  { %v1267_v60 = vrot.slane %v1265_v52, 2  ;;  %1427 = vst [vmem:[%s2461_s4 + $0xc] sm:$0x3] %v1416_v59 }
 0x4f6   :  { %1277 = vmatmul.bf16.vlgmr.msra.gmra.mxu0 %v1267_v60  ;;  %1290 = vmatmul.bf16.vlgmr.msra.gmra.mxu1 %v1267_v60 }
 0x4f7   :  { %1303 = vmatmul.bf16.vlgmr.msra.gmra.mxu2 %v1267_v60  ;;  %1316 = vmatmul.bf16.vlgmr.msra.gmra.mxu3 %v1267_v60 }
 0x573   :  { %v1278_v63 = vpop.f32.mrf.mxu0  ;;  %v1291_v0 = vpop.f32.mrf.mxu1 }
 0x574   :  { %v1325_v7 = vrot.slane %v1278_v63, 2  ;;  %v1326_v8 = vrot.slane %v1291_v0, 2 }
 0x576   :  { %v1333_v11 = vadd.f32 %v1325_v7, %v2197_v25  ;;  %v1334_v12 = vadd.f32 %v1326_v8, %v2199_v26 }
 0x578   :  { %v1606_v19 = vmul.f32 -1.442695, %v1333_v11  ;;  %v1607_v20 = vmul.f32 -1.442695, %v1334_v12 }
 0x57a   :  { %1759 = vpow2.f32 %v1606_v19  ;;  %v1304_v23 = vpop.f32.mrf.mxu2  ;;  %v1317_v24 = vpop.f32.mrf.mxu3 }
 0x57b   :  { %1761 = vpow2.f32 %v1607_v20  ;;  %v1328_v31 = vrot.slane %v1317_v24, 2  ;;  %v1280_v32 = vpop.f32.mrf.mxu0  ;;  %v1293_v37 = vpop.f32.mrf.mxu1  ;;  %v1327_v26 = vrot.slane %v1304_v23, 2 }
 0x57d   :  { %v1336_v38 = vadd.f32 %v1328_v31, %v2466_v43  ;;  %v1335_v1 = vadd.f32 %v1327_v26, %v2467_v13 }
 0x57f   :  { %v1608_v49 = vmul.f32 -1.442695, %v1336_v38 }
 0x580   :  { %v1760_v50 = vpop.eup %1759 }
 0x581   :  { %v1762_v55 = vpop.eup %1761  ;;  %v1340_v56 = vadd.f32 1.0, %v1760_v50  ;;  %1763 = vpow2.f32 %v1608_v49 }
 0x582   :  { %v1359_v3 = vadd.f32 1.0, %v1762_v55  ;;  %v1306_v25 = vpop.f32.mrf.mxu2  ;;  %v1319_v4 = vpop.f32.mrf.mxu3 }
 0x583   :  { %1765 = vrcp.f32 %v1340_v56  ;;  %v1352_v41 = vand.u32 2147483648, %v1340_v56  ;;  %v1350_v61 = vand.u32 2147483647, %v1340_v56  ;;  %vm1346_vm8 = vweird.f32 %v1340_v56 }
 0x584   :  { %1767 = vrcp.f32 %v1359_v3  ;;  %v1371_v44 = vand.u32 2147483648, %v1359_v3  ;;  %v1369_v57 = vand.u32 2147483647, %v1359_v3  ;;  %vm1365_vm9 = vweird.f32 %v1359_v3 }
 0x585   :  { %v1353_v13 = vor.u32 1.1754944e-38, %v1352_v41  ;;  %vm1351_vm12 = vcmp.eq.f32.partialorder %v1350_v61, 8.507059e+37 }
 0x586   :  { %v1372_v10 = vor.u32 1.1754944e-38, %v1371_v44  ;;  %vm1370_vm13 = vcmp.eq.f32.partialorder %v1369_v57, 8.507059e+37 }
 0x587   :  { %v1764_v5 = vpop.eup %1763 }
 0x588   :  { %v1379_v6 = vadd.f32 1.0, %v1764_v5 }
 0x589   :  { %v1766_v21 = vpop.eup %1765 }
 0x58a   :  { %v1768_v18 = vpop.eup %1767  ;;  %v1342_v29 = vmul.f32 %v1766_v21, %v1340_v56  ;;  %1769 = vrcp.f32 %v1379_v6  ;;  %vm1347_vm6 = vweird.f32 %v1766_v21  ;;  %v1391_v39 = vand.u32 2147483648, %v1379_v6 }
 0x58b   :  { %v1361_v43 = vmul.f32 %v1768_v18, %v1359_v3  ;;  %1771 = vtanh.f32 %v1335_v1  ;;  %vm1366_vm7 = vweird.f32 %v1768_v18  ;;  %vm1348_vm10 = vmor %vm1346_vm8, %vm1347_vm6  ;;  %vm1385_vm15 = vweird.f32 %v1379_v6 }
 0x58c   :  { %v1343_v28 = vsub.f32 1.0, %v1342_v29  ;;  %vm1367_vm11 = vmor %vm1365_vm9, %vm1366_vm7  ;;  %v1389_v22 = vand.u32 2147483647, %v1379_v6  ;;  %v1392_v47 = vor.u32 1.1754944e-38, %v1391_v39 }
 0x58d   :  { %v1362_v33 = vsub.f32 1.0, %v1361_v43 }
 0x58e   :  { %v1344_v42 = vmul.f32 %v1766_v21, %v1343_v28  ;;  %vm1390_vm1 = vcmp.eq.f32.partialorder %v1389_v22, 8.507059e+37 }
 0x58f   :  { %v1363_v53 = vmul.f32 %v1768_v18, %v1362_v33 }
 0x590   :  { %v1770_v17 = vpop.eup %1769  ;;  %v1345_v62 = vadd.f32 %v1766_v21, %v1344_v42 }
 0x591   :  { %v1364_v30 = vadd.f32 %v1768_v18, %v1363_v53  ;;  %v1381_v16 = vmul.f32 %v1770_v17, %v1379_v6  ;;  %v1772_v27 = vpop.eup %1771  ;;  %vm1386_vm14 = vweird.f32 %v1770_v17 }
 0x592   :  { %v1349_v2 = vsel %vm1348_vm10, %v1766_v21, %v1345_v62  ;;  %vm1387_vm0 = vmor %vm1385_vm15, %vm1386_vm14 }
 0x593   :  { %v1354_v15 = vsel %vm1351_vm12, %v1353_v13, %v1349_v2  ;;  %v1368_v14 = vsel %vm1367_vm11, %v1768_v18, %v1364_v30  ;;  %v1382_v46 = vsub.f32 1.0, %v1381_v16 }
 0x594   :  { %v1373_v36 = vsel %vm1370_vm13, %v1372_v10, %v1368_v14  ;;  %v1399_v54 = vmul.f32 %v1772_v27, %v1354_v15 }
 0x595   :  { %v1398_v58 = vmul.f32 %v1396_v45, %v1373_v36  ;;  %v1383_v34 = vmul.f32 %v1770_v17, %v1382_v46 }
 0x597   :  { %v1400_v9 = vadd.f32 %v1399_v54, %v1398_v58  ;;  %v1384_v35 = vadd.f32 %v1770_v17, %v1383_v34 }
 0x599   :  { %1773 = vtanh.f32 %v1400_v9  ;;  %v1388_v40 = vsel %vm1387_vm0, %v1770_v17, %v1384_v35 }
 0x59a   :  { %v1393_v51 = vsel %vm1390_vm1, %v1392_v47, %v1388_v40 }
 0x59f   :  { %v1774_v48 = vpop.eup %1773 }
 0x5a0   :  { %v1402_v52 = vmul.f32 %v1774_v48, %v1393_v51 }
 0x5a2   :  { %v1419_v59 = vrot.slane %v1402_v52, 6 }
 0x5a4   :  { %1428 = vst [vmem:[%s2461_s4 + $0xe] sm:$0x3] %v1419_v59 }

</bundles_post_ra>
